<compile_context>
chip_gen: v7x
topology: tpu7x:2x2x1
jax: 0.10.0
libtpu: 0.0.40
codegen_flags: <defaults>
</compile_context>

<pallas_src>
import numpy as np
import jax
import jax.numpy as jnp
from jax.experimental import pallas as pl
from jax.experimental.pallas import tpu as pltpu

# ---- configuration (small, valid w.r.t. the module's asserts) -------------
D_AUG = 32      # d_aug
D_CODE = 16     # d_code
D_MID = 64      # d_mid   (must be > d_aug + d_code for the skip layer)
D_OUT = 32      # d_out
N_MID = 4       # n_mid   (must be > 3)
WITH_GRAD = False

DIMS = [D_AUG + D_CODE] + [D_MID] * N_MID + [D_OUT]
SKIP_IN = [N_MID // 2 + 1]          # == [3]
NUM_LAYERS = len(DIMS)              # == 6
X_SKIP = D_MID - D_AUG - D_CODE     # output channels of lin2 (== 16)

MAX_TILE_N = 8192                   # points (lanes) per grid step

# matmul flops per point (for cost_estimate)
_FLOPS_PER_POINT = 2 * (3 * 64 + 64 * D_AUG + (D_AUG + D_CODE) * 2 * D_MID
                        + D_MID * D_MID + D_MID * X_SKIP + X_SKIP * D_MID
                        + D_MID * D_OUT)


# ---------------------------- Pallas kernel --------------------------------
def fusion_kernel(pos_ref, code_ref,
                  m1w, m1b, m2w, m2b,
                  wstk, b0, w1, b1, w2, b2, w3a, b3, w4, b4,
                  out_ref):
    f32, bf16 = jnp.float32, jnp.bfloat16

    p = pos_ref[...]                          # (3, T) f32
    c_bf = code_ref[...].astype(bf16)         # (D_CODE, T)

    # mlp_1 layer 1: Conv1d(3,64,1) -> ReLU.  K=3 is pure weight-latch overhead
    # on the MXU, so do it on the VPU as 3 broadcast multiply-adds.
    w = m1w[...]                              # (64, 3) f32
    h = (w[:, 0:1] * p[0:1, :]
         + w[:, 1:2] * p[1:2, :]
         + w[:, 2:3] * p[2:3, :]
         + m1b[...])
    h = jnp.maximum(h, 0.0)

    # mlp_1 layer 2: Conv1d(64, d_aug, 1)   (no ReLU)
    pf = jnp.dot(m2w[...], h.astype(bf16), preferred_element_type=f32) + m2b[...]
    pf_bf = pf.astype(bf16)                   # (D_AUG, T)

    # cat([pos_feat, code]) built once; fed once through the stacked weight
    # [W0 ; W3_skip]: rows [0:D_MID] = lin0 pre-activation, rows [D_MID:] =
    # lin3's precomputed partial sum over its skip inputs (no 2nd concat).
    x0 = jnp.concatenate([pf_bf, c_bf], axis=0)                 # (48, T) bf16
    y = jnp.dot(wstk[...], x0, preferred_element_type=f32)      # (128, T) f32
    skip_part = y[D_MID:, :]                                    # (64, T)

    # l=0 : lin0 -> ReLU
    x = jnp.maximum(y[:D_MID, :] + b0[...], 0.0)                # (64, T)
    # l=1 : lin1 -> ReLU
    x = jnp.maximum(jnp.dot(w1[...], x.astype(bf16), preferred_element_type=f32)
                    + b1[...], 0.0)                             # (64, T)
    # l=2 : lin2 -> ReLU   (out = d_mid - d_aug - d_code channels)
    x = jnp.maximum(jnp.dot(w2[...], x.astype(bf16), preferred_element_type=f32)
                    + b2[...], 0.0)                             # (16, T)
    # l=3 : lin3(cat([x, pos_feat, code])) -> ReLU == W3a @ x + skip_part
    x = jnp.maximum(jnp.dot(w3a[...], x.astype(bf16), preferred_element_type=f32)
                    + skip_part + b3[...], 0.0)                 # (64, T)
    # l=4 : lin4 (last layer, no ReLU)
    out_ref[...] = (jnp.dot(w4[...], x.astype(bf16), preferred_element_type=f32)
                    + b4[...]).astype(out_ref.dtype)            # (D_OUT, T)


# ------------------------------ wrapper -------------------------------------
def _pick_tile(n):
    """Lane-tile size: full width when tiny, else largest 128-multiple <= min(n, MAX)."""
    if n <= 128:
        return n
    return min(MAX_TILE_N, (n // 128) * 128)


def fusion_net_pallas(params, pos_bcn, code_bcn, out_dtype=jnp.bfloat16):
    """pos_bcn: (B, 3, N), code_bcn: (B, D_CODE, N) -> ((B, D_OUT, N), None)."""
    B, _, N = pos_bcn.shape
    TILE_N = _pick_tile(N)
    n_tiles = pl.cdiv(N, TILE_N)          # ragged last tile masked by Pallas

    f32, bf16 = jnp.float32, jnp.bfloat16
    # Transposed weights (C_out, C_in) for y = W^T @ x; biases as (C_out, 1).
    m1w = params['m1_w'].T.astype(f32)                 # (64, 3)   VPU path, f32
    m1b = params['m1_b'].T.astype(f32)                 # (64, 1)
    m2w = params['m2_w'].T.astype(bf16)                # (D_AUG, 64)
    m2b = params['m2_b'].T.astype(f32)                 # (D_AUG, 1)
    w0t = params['w0'].T.astype(bf16)                  # (64, 48)
    w3t = params['w3'].T                               # (64, 64) cols=[x3|pf|code]
    wstk = jnp.concatenate([w0t, w3t[:, X_SKIP:].astype(bf16)], axis=0)  # (128, 48)
    w3a = w3t[:, :X_SKIP].astype(bf16)                 # (64, 16)
    weights = [m1w, m1b, m2w, m2b,
               wstk, params['b0'].T.astype(f32),
               params['w1'].T.astype(bf16), params['b1'].T.astype(f32),
               params['w2'].T.astype(bf16), params['b2'].T.astype(f32),
               w3a, params['b3'].T.astype(f32),
               params['w4'].T.astype(bf16), params['b4'].T.astype(f32)]

    def wspec(arr):  # resident weights: constant block index, no re-DMA per step
        return pl.BlockSpec(arr.shape, lambda b, j: (0, 0))

    pos_f32 = pos_bcn.astype(f32)         # no-op when already f32; no pad pass
    bytes_accessed = int(pos_f32.size * 4
                         + code_bcn.size * code_bcn.dtype.itemsize
                         + B * D_OUT * N * jnp.dtype(out_dtype).itemsize
                         + sum(int(w.size) * w.dtype.itemsize for w in weights))

    out = pl.pallas_call(
        fusion_kernel,
        out_shape=jax.ShapeDtypeStruct((B, D_OUT, N), out_dtype),
        grid=(B, n_tiles),
        in_specs=[pl.BlockSpec((None, 3, TILE_N), lambda b, j: (b, 0, j)),
                  pl.BlockSpec((None, D_CODE, TILE_N), lambda b, j: (b, 0, j))]
                 + [wspec(w) for w in weights],
        out_specs=pl.BlockSpec((None, D_OUT, TILE_N), lambda b, j: (b, 0, j)),
        compiler_params=pltpu.CompilerParams(
            dimension_semantics=("parallel", "parallel"),
            vmem_limit_bytes=48 * 1024 * 1024),
        cost_estimate=pl.CostEstimate(flops=_FLOPS_PER_POINT * B * N,
                                      transcendentals=0,
                                      bytes_accessed=bytes_accessed),
    )(pos_f32, code_bcn, *weights)

    # with_grad=False -> xx is None (the PyTorch forward returns (x, None))
    return out, None


# ------------------------- deterministic params ------------------------------
def init_params(key):
    params = {}
    keys = jax.random.split(key, 2 * (2 + NUM_LAYERS - 1))

    def lin(kw, kb, cin, cout, scale):
        w = jax.random.normal(kw, (cin, cout), jnp.float32) * scale
        b = jax.random.normal(kb, (1, cout), jnp.float32) * 0.01
        return w, b

    # mlp_1
    params['m1_w'], params['m1_b'] = lin(keys[0], keys[1], 3, 64, 0.3)
    params['m2_w'], params['m2_b'] = lin(keys[2], keys[3], 64, D_AUG, 0.1)
    # lin0 .. lin4
    for l in range(NUM_LAYERS - 1):
        if l + 1 in SKIP_IN:
            out_dim = DIMS[l + 1] - D_AUG - D_CODE
        else:
            out_dim = DIMS[l + 1]
        params[f'w{l}'], params[f'b{l}'] = lin(keys[4 + 2 * l], keys[5 + 2 * l],
                                               DIMS[l], out_dim, 0.1)
    return params


# --------------------------- pure-JAX reference ------------------------------
def ref_forward(params, pos_bcn, code_bcn):
    B, _, N = pos_bcn.shape
    p = jnp.transpose(pos_bcn, (0, 2, 1)).reshape(B * N, 3)
    c = jnp.transpose(code_bcn, (0, 2, 1)).reshape(B * N, D_CODE)
    h = jax.nn.relu(p @ params['m1_w'] + params['m1_b'])
    pos_feat = h @ params['m2_w'] + params['m2_b']
    x = jnp.concatenate([pos_feat, c], axis=-1)
    for l in range(NUM_LAYERS - 1):
        if l in SKIP_IN:
            x = jnp.concatenate([x, pos_feat, c], axis=-1)
        x = x @ params[f'w{l}'] + params[f'b{l}']
        if l < NUM_LAYERS - 2:
            x = jax.nn.relu(x)
    return x.reshape(B, N, D_OUT).transpose(0, 2, 1)


# --------------------------------- main --------------------------------------
if __name__ == "__main__":
    key = jax.random.PRNGKey(0)
    kp, kc, kparams = jax.random.split(key, 3)
    params = init_params(kparams)

    # main small-shape check
    B, N = 2, 512
    pos = jax.random.normal(kp, (B, 3, N), jnp.float32)
    code = jax.random.normal(kc, (B, D_CODE, N), jnp.float32)

    out, xx = fusion_net_pallas(params, pos, code)
    out = jax.block_until_ready(out)
    assert out.shape == (B, D_OUT, N) and xx is None

    ref = jax.block_until_ready(ref_forward(params, pos, code))
    np.testing.assert_allclose(np.asarray(out.astype(jnp.float32)),
                               np.asarray(ref), rtol=3e-2, atol=3e-2)

    # ragged point count (exercises the cdiv grid / masked final tile path)
    B2, N2 = 1, 200
    pos2 = jax.random.normal(jax.random.PRNGKey(7), (B2, 3, N2), jnp.float32)
    code2 = jax.random.normal(jax.random.PRNGKey(8), (B2, D_CODE, N2), jnp.float32)
    out2, _ = fusion_net_pallas(params, pos2, code2)
    out2 = jax.block_until_ready(out2)
    ref2 = jax.block_until_ready(ref_forward(params, pos2, code2))
    assert out2.shape == (B2, D_OUT, N2)
    np.testing.assert_allclose(np.asarray(out2.astype(jnp.float32)),
                               np.asarray(ref2), rtol=3e-2, atol=3e-2)

    print("KERNEL_OK")
</pallas_src>

<mosaic_0001>
module attributes {stable_mosaic.version = 11 : i64} {
  func.func @fusion_kernel(%arg0: i32, %arg1: i32, %arg2: memref<1x3x512xf32, #tpu.memory_space<vmem>>, %arg3: memref<1x16x512xf32, #tpu.memory_space<vmem>>, %arg4: memref<64x3xf32, #tpu.memory_space<vmem>>, %arg5: memref<64x1xf32, #tpu.memory_space<vmem>>, %arg6: memref<32x64xbf16, #tpu.memory_space<vmem>>, %arg7: memref<32x1xf32, #tpu.memory_space<vmem>>, %arg8: memref<128x48xbf16, #tpu.memory_space<vmem>>, %arg9: memref<64x1xf32, #tpu.memory_space<vmem>>, %arg10: memref<64x64xbf16, #tpu.memory_space<vmem>>, %arg11: memref<64x1xf32, #tpu.memory_space<vmem>>, %arg12: memref<16x64xbf16, #tpu.memory_space<vmem>>, %arg13: memref<16x1xf32, #tpu.memory_space<vmem>>, %arg14: memref<64x16xbf16, #tpu.memory_space<vmem>>, %arg15: memref<64x1xf32, #tpu.memory_space<vmem>>, %arg16: memref<32x64xbf16, #tpu.memory_space<vmem>>, %arg17: memref<32x1xf32, #tpu.memory_space<vmem>>, %arg18: memref<1x32x512xbf16, #tpu.memory_space<vmem>>) attributes {dimension_semantics = [#tpu.dimension_semantics<parallel>, #tpu.dimension_semantics<parallel>], iteration_bounds = array<i64: 2, 1>, scalar_prefetch = 0 : i64, scratch_operands = 0 : i64, tpu.core_type = #tpu.core_type<tc>, window_params = [{transform_indices = @transform_0, window_bounds = array<i64: 1, 3, 512>}, {transform_indices = @transform_1, window_bounds = array<i64: 1, 16, 512>}, {pipeline_mode = #tpu.pipeline_mode<synchronous>, transform_indices = @transform_2, window_bounds = array<i64: 64, 3>}, {pipeline_mode = #tpu.pipeline_mode<synchronous>, transform_indices = @transform_3, window_bounds = array<i64: 64, 1>}, {pipeline_mode = #tpu.pipeline_mode<synchronous>, transform_indices = @transform_4, window_bounds = array<i64: 32, 64>}, {pipeline_mode = #tpu.pipeline_mode<synchronous>, transform_indices = @transform_5, window_bounds = array<i64: 32, 1>}, {pipeline_mode = #tpu.pipeline_mode<synchronous>, transform_indices = @transform_6, window_bounds = array<i64: 128, 48>}, {pipeline_mode = #tpu.pipeline_mode<synchronous>, transform_indices = @transform_7, window_bounds = array<i64: 64, 1>}, {pipeline_mode = #tpu.pipeline_mode<synchronous>, transform_indices = @transform_8, window_bounds = array<i64: 64, 64>}, {pipeline_mode = #tpu.pipeline_mode<synchronous>, transform_indices = @transform_9, window_bounds = array<i64: 64, 1>}, {pipeline_mode = #tpu.pipeline_mode<synchronous>, transform_indices = @transform_10, window_bounds = array<i64: 16, 64>}, {pipeline_mode = #tpu.pipeline_mode<synchronous>, transform_indices = @transform_11, window_bounds = array<i64: 16, 1>}, {pipeline_mode = #tpu.pipeline_mode<synchronous>, transform_indices = @transform_12, window_bounds = array<i64: 64, 16>}, {pipeline_mode = #tpu.pipeline_mode<synchronous>, transform_indices = @transform_13, window_bounds = array<i64: 64, 1>}, {pipeline_mode = #tpu.pipeline_mode<synchronous>, transform_indices = @transform_14, window_bounds = array<i64: 32, 64>}, {pipeline_mode = #tpu.pipeline_mode<synchronous>, transform_indices = @transform_15, window_bounds = array<i64: 32, 1>}, {transform_indices = @transform_16, window_bounds = array<i64: 1, 32, 512>}]} {
    %c0 = arith.constant 0 : index
    %c0_0 = arith.constant 0 : index
    %c0_1 = arith.constant 0 : index
    %0 = vector.load %arg2[%c0, %c0_0, %c0_1] : memref<1x3x512xf32, #tpu.memory_space<vmem>>, vector<1x3x512xf32>
    %1 = vector.shape_cast %0 : vector<1x3x512xf32> to vector<3x512xf32>
    %c0_2 = arith.constant 0 : index
    %c0_3 = arith.constant 0 : index
    %c0_4 = arith.constant 0 : index
    %2 = vector.load %arg3[%c0_2, %c0_3, %c0_4] : memref<1x16x512xf32, #tpu.memory_space<vmem>>, vector<1x16x512xf32>
    %3 = vector.shape_cast %2 : vector<1x16x512xf32> to vector<16x512xf32>
    %4 = arith.truncf %3 : vector<16x512xf32> to vector<16x512xbf16>
    %c0_5 = arith.constant 0 : index
    %c0_6 = arith.constant 0 : index
    %5 = vector.load %arg4[%c0_5, %c0_6] : memref<64x3xf32, #tpu.memory_space<vmem>>, vector<64x3xf32>
    %6 = vector.extract_strided_slice %5 {offsets = [0, 0], sizes = [64, 1], strides = [1, 1]} : vector<64x3xf32> to vector<64x1xf32>
    %7 = vector.extract_strided_slice %1 {offsets = [0, 0], sizes = [1, 512], strides = [1, 1]} : vector<3x512xf32> to vector<1x512xf32>
    %8 = vector.broadcast %6 : vector<64x1xf32> to vector<64x512xf32>
    %9 = vector.broadcast %7 : vector<1x512xf32> to vector<64x512xf32>
    %10 = arith.mulf %8, %9 : vector<64x512xf32>
    %11 = vector.extract_strided_slice %5 {offsets = [0, 1], sizes = [64, 1], strides = [1, 1]} : vector<64x3xf32> to vector<64x1xf32>
    %12 = vector.extract_strided_slice %1 {offsets = [1, 0], sizes = [1, 512], strides = [1, 1]} : vector<3x512xf32> to vector<1x512xf32>
    %13 = vector.broadcast %11 : vector<64x1xf32> to vector<64x512xf32>
    %14 = vector.broadcast %12 : vector<1x512xf32> to vector<64x512xf32>
    %15 = arith.mulf %13, %14 : vector<64x512xf32>
    %16 = arith.addf %10, %15 : vector<64x512xf32>
    %17 = vector.extract_strided_slice %5 {offsets = [0, 2], sizes = [64, 1], strides = [1, 1]} : vector<64x3xf32> to vector<64x1xf32>
    %18 = vector.extract_strided_slice %1 {offsets = [2, 0], sizes = [1, 512], strides = [1, 1]} : vector<3x512xf32> to vector<1x512xf32>
    %19 = vector.broadcast %17 : vector<64x1xf32> to vector<64x512xf32>
    %20 = vector.broadcast %18 : vector<1x512xf32> to vector<64x512xf32>
    %21 = arith.mulf %19, %20 : vector<64x512xf32>
    %22 = arith.addf %16, %21 : vector<64x512xf32>
    %c0_7 = arith.constant 0 : index
    %c0_8 = arith.constant 0 : index
    %23 = vector.load %arg5[%c0_7, %c0_8] : memref<64x1xf32, #tpu.memory_space<vmem>>, vector<64x1xf32>
    %24 = vector.broadcast %23 : vector<64x1xf32> to vector<64x512xf32>
    %25 = arith.addf %22, %24 : vector<64x512xf32>
    %cst = arith.constant 0.000000e+00 : f32
    %26 = vector.broadcast %cst : f32 to vector<64x512xf32>
    %27 = arith.maximumf %25, %26 : vector<64x512xf32>
    %c0_9 = arith.constant 0 : index
    %c0_10 = arith.constant 0 : index
    %28 = vector.load %arg6[%c0_9, %c0_10] : memref<32x64xbf16, #tpu.memory_space<vmem>>, vector<32x64xbf16>
    %29 = arith.truncf %27 : vector<64x512xf32> to vector<64x512xbf16>
    %cst_11 = arith.constant dense<0.000000e+00> : vector<32x512xf32>
    %30 = tpu.matmul %28, %29, %cst_11 {dimension_numbers = #tpu.dot_dimension_numbers<[1], [0], [0], [1], [0, 0, 1, 1], [], []>} : vector<32x64xbf16>, vector<64x512xbf16>, vector<32x512xf32> -> vector<32x512xf32>
    %c0_12 = arith.constant 0 : index
    %c0_13 = arith.constant 0 : index
    %31 = vector.load %arg7[%c0_12, %c0_13] : memref<32x1xf32, #tpu.memory_space<vmem>>, vector<32x1xf32>
    %32 = vector.broadcast %31 : vector<32x1xf32> to vector<32x512xf32>
    %33 = arith.addf %30, %32 : vector<32x512xf32>
    %34 = arith.truncf %33 : vector<32x512xf32> to vector<32x512xbf16>
    %35 = tpu.concatenate %34, %4 in 0 : vector<32x512xbf16>, vector<16x512xbf16> -> vector<48x512xbf16>
    %c0_14 = arith.constant 0 : index
    %c0_15 = arith.constant 0 : index
    %36 = vector.load %arg8[%c0_14, %c0_15] : memref<128x48xbf16, #tpu.memory_space<vmem>>, vector<128x48xbf16>
    %cst_16 = arith.constant dense<0.000000e+00> : vector<128x512xf32>
    %37 = tpu.matmul %36, %35, %cst_16 {dimension_numbers = #tpu.dot_dimension_numbers<[1], [0], [0], [1], [0, 0, 1, 1], [], []>} : vector<128x48xbf16>, vector<48x512xbf16>, vector<128x512xf32> -> vector<128x512xf32>
    %38 = vector.extract_strided_slice %37 {offsets = [64, 0], sizes = [64, 512], strides = [1, 1]} : vector<128x512xf32> to vector<64x512xf32>
    %39 = vector.extract_strided_slice %37 {offsets = [0, 0], sizes = [64, 512], strides = [1, 1]} : vector<128x512xf32> to vector<64x512xf32>
    %c0_17 = arith.constant 0 : index
    %c0_18 = arith.constant 0 : index
    %40 = vector.load %arg9[%c0_17, %c0_18] : memref<64x1xf32, #tpu.memory_space<vmem>>, vector<64x1xf32>
    %41 = vector.broadcast %40 : vector<64x1xf32> to vector<64x512xf32>
    %42 = arith.addf %39, %41 : vector<64x512xf32>
    %cst_19 = arith.constant 0.000000e+00 : f32
    %43 = vector.broadcast %cst_19 : f32 to vector<64x512xf32>
    %44 = arith.maximumf %42, %43 : vector<64x512xf32>
    %c0_20 = arith.constant 0 : index
    %c0_21 = arith.constant 0 : index
    %45 = vector.load %arg10[%c0_20, %c0_21] : memref<64x64xbf16, #tpu.memory_space<vmem>>, vector<64x64xbf16>
    %46 = arith.truncf %44 : vector<64x512xf32> to vector<64x512xbf16>
    %cst_22 = arith.constant dense<0.000000e+00> : vector<64x512xf32>
    %47 = tpu.matmul %45, %46, %cst_22 {dimension_numbers = #tpu.dot_dimension_numbers<[1], [0], [0], [1], [0, 0, 1, 1], [], []>} : vector<64x64xbf16>, vector<64x512xbf16>, vector<64x512xf32> -> vector<64x512xf32>
    %c0_23 = arith.constant 0 : index
    %c0_24 = arith.constant 0 : index
    %48 = vector.load %arg11[%c0_23, %c0_24] : memref<64x1xf32, #tpu.memory_space<vmem>>, vector<64x1xf32>
    %49 = vector.broadcast %48 : vector<64x1xf32> to vector<64x512xf32>
    %50 = arith.addf %47, %49 : vector<64x512xf32>
    %cst_25 = arith.constant 0.000000e+00 : f32
    %51 = vector.broadcast %cst_25 : f32 to vector<64x512xf32>
    %52 = arith.maximumf %50, %51 : vector<64x512xf32>
    %c0_26 = arith.constant 0 : index
    %c0_27 = arith.constant 0 : index
    %53 = vector.load %arg12[%c0_26, %c0_27] : memref<16x64xbf16, #tpu.memory_space<vmem>>, vector<16x64xbf16>
    %54 = arith.truncf %52 : vector<64x512xf32> to vector<64x512xbf16>
    %cst_28 = arith.constant dense<0.000000e+00> : vector<16x512xf32>
    %55 = tpu.matmul %53, %54, %cst_28 {dimension_numbers = #tpu.dot_dimension_numbers<[1], [0], [0], [1], [0, 0, 1, 1], [], []>} : vector<16x64xbf16>, vector<64x512xbf16>, vector<16x512xf32> -> vector<16x512xf32>
    %c0_29 = arith.constant 0 : index
    %c0_30 = arith.constant 0 : index
    %56 = vector.load %arg13[%c0_29, %c0_30] : memref<16x1xf32, #tpu.memory_space<vmem>>, vector<16x1xf32>
    %57 = vector.broadcast %56 : vector<16x1xf32> to vector<16x512xf32>
    %58 = arith.addf %55, %57 : vector<16x512xf32>
    %cst_31 = arith.constant 0.000000e+00 : f32
    %59 = vector.broadcast %cst_31 : f32 to vector<16x512xf32>
    %60 = arith.maximumf %58, %59 : vector<16x512xf32>
    %c0_32 = arith.constant 0 : index
    %c0_33 = arith.constant 0 : index
    %61 = vector.load %arg14[%c0_32, %c0_33] : memref<64x16xbf16, #tpu.memory_space<vmem>>, vector<64x16xbf16>
    %62 = arith.truncf %60 : vector<16x512xf32> to vector<16x512xbf16>
    %cst_34 = arith.constant dense<0.000000e+00> : vector<64x512xf32>
    %63 = tpu.matmul %61, %62, %cst_34 {dimension_numbers = #tpu.dot_dimension_numbers<[1], [0], [0], [1], [0, 0, 1, 1], [], []>} : vector<64x16xbf16>, vector<16x512xbf16>, vector<64x512xf32> -> vector<64x512xf32>
    %64 = arith.addf %63, %38 : vector<64x512xf32>
    %c0_35 = arith.constant 0 : index
    %c0_36 = arith.constant 0 : index
    %65 = vector.load %arg15[%c0_35, %c0_36] : memref<64x1xf32, #tpu.memory_space<vmem>>, vector<64x1xf32>
    %66 = vector.broadcast %65 : vector<64x1xf32> to vector<64x512xf32>
    %67 = arith.addf %64, %66 : vector<64x512xf32>
    %cst_37 = arith.constant 0.000000e+00 : f32
    %68 = vector.broadcast %cst_37 : f32 to vector<64x512xf32>
    %69 = arith.maximumf %67, %68 : vector<64x512xf32>
    %c0_38 = arith.constant 0 : index
    %c0_39 = arith.constant 0 : index
    %70 = vector.load %arg16[%c0_38, %c0_39] : memref<32x64xbf16, #tpu.memory_space<vmem>>, vector<32x64xbf16>
    %71 = arith.truncf %69 : vector<64x512xf32> to vector<64x512xbf16>
    %cst_40 = arith.constant dense<0.000000e+00> : vector<32x512xf32>
    %72 = tpu.matmul %70, %71, %cst_40 {dimension_numbers = #tpu.dot_dimension_numbers<[1], [0], [0], [1], [0, 0, 1, 1], [], []>} : vector<32x64xbf16>, vector<64x512xbf16>, vector<32x512xf32> -> vector<32x512xf32>
    %c0_41 = arith.constant 0 : index
    %c0_42 = arith.constant 0 : index
    %73 = vector.load %arg17[%c0_41, %c0_42] : memref<32x1xf32, #tpu.memory_space<vmem>>, vector<32x1xf32>
    %74 = vector.broadcast %73 : vector<32x1xf32> to vector<32x512xf32>
    %75 = arith.addf %72, %74 : vector<32x512xf32>
    %76 = arith.truncf %75 : vector<32x512xf32> to vector<32x512xbf16>
    %c0_43 = arith.constant 0 : index
    %c0_44 = arith.constant 0 : index
    %c0_45 = arith.constant 0 : index
    %77 = vector.load %arg18[%c0_43, %c0_44, %c0_45] : memref<1x32x512xbf16, #tpu.memory_space<vmem>>, vector<1x32x512xbf16>
    %78 = vector.shape_cast %77 : vector<1x32x512xbf16> to vector<32x512xbf16>
    %79 = vector.shape_cast %76 : vector<32x512xbf16> to vector<1x32x512xbf16>
    tpu.vector_store %arg18[%c0_43, %c0_44, %c0_45], %79 {strides = array<i32>} : memref<1x32x512xbf16, #tpu.memory_space<vmem>>, vector<1x32x512xbf16>,
    return
  }
  func.func @transform_0(%arg0: i32, %arg1: i32) -> (i32, i32, i32) {
    %c0_i32 = arith.constant 0 : i32
    %c0_i32_0 = arith.constant 0 : i32
    return %arg0, %c0_i32, %arg1 : i32, i32, i32
  }
  func.func @transform_1(%arg0: i32, %arg1: i32) -> (i32, i32, i32) {
    %c0_i32 = arith.constant 0 : i32
    %c0_i32_0 = arith.constant 0 : i32
    return %arg0, %c0_i32, %arg1 : i32, i32, i32
  }
  func.func @transform_2(%arg0: i32, %arg1: i32) -> (i32, i32) {
    %c0_i32 = arith.constant 0 : i32
    %c0_i32_0 = arith.constant 0 : i32
    %c0_i32_1 = arith.constant 0 : i32
    return %c0_i32, %c0_i32_0 : i32, i32
  }
  func.func @transform_3(%arg0: i32, %arg1: i32) -> (i32, i32) {
    %c0_i32 = arith.constant 0 : i32
    %c0_i32_0 = arith.constant 0 : i32
    %c0_i32_1 = arith.constant 0 : i32
    return %c0_i32, %c0_i32_0 : i32, i32
  }
  func.func @transform_4(%arg0: i32, %arg1: i32) -> (i32, i32) {
    %c0_i32 = arith.constant 0 : i32
    %c0_i32_0 = arith.constant 0 : i32
    %c0_i32_1 = arith.constant 0 : i32
    return %c0_i32, %c0_i32_0 : i32, i32
  }
  func.func @transform_5(%arg0: i32, %arg1: i32) -> (i32, i32) {
    %c0_i32 = arith.constant 0 : i32
    %c0_i32_0 = arith.constant 0 : i32
    %c0_i32_1 = arith.constant 0 : i32
    return %c0_i32, %c0_i32_0 : i32, i32
  }
  func.func @transform_6(%arg0: i32, %arg1: i32) -> (i32, i32) {
    %c0_i32 = arith.constant 0 : i32
    %c0_i32_0 = arith.constant 0 : i32
    %c0_i32_1 = arith.constant 0 : i32
    return %c0_i32, %c0_i32_0 : i32, i32
  }
  func.func @transform_7(%arg0: i32, %arg1: i32) -> (i32, i32) {
    %c0_i32 = arith.constant 0 : i32
    %c0_i32_0 = arith.constant 0 : i32
    %c0_i32_1 = arith.constant 0 : i32
    return %c0_i32, %c0_i32_0 : i32, i32
  }
  func.func @transform_8(%arg0: i32, %arg1: i32) -> (i32, i32) {
    %c0_i32 = arith.constant 0 : i32
    %c0_i32_0 = arith.constant 0 : i32
    %c0_i32_1 = arith.constant 0 : i32
    return %c0_i32, %c0_i32_0 : i32, i32
  }
  func.func @transform_9(%arg0: i32, %arg1: i32) -> (i32, i32) {
    %c0_i32 = arith.constant 0 : i32
    %c0_i32_0 = arith.constant 0 : i32
    %c0_i32_1 = arith.constant 0 : i32
    return %c0_i32, %c0_i32_0 : i32, i32
  }
  func.func @transform_10(%arg0: i32, %arg1: i32) -> (i32, i32) {
    %c0_i32 = arith.constant 0 : i32
    %c0_i32_0 = arith.constant 0 : i32
    %c0_i32_1 = arith.constant 0 : i32
    return %c0_i32, %c0_i32_0 : i32, i32
  }
  func.func @transform_11(%arg0: i32, %arg1: i32) -> (i32, i32) {
    %c0_i32 = arith.constant 0 : i32
    %c0_i32_0 = arith.constant 0 : i32
    %c0_i32_1 = arith.constant 0 : i32
    return %c0_i32, %c0_i32_0 : i32, i32
  }
  func.func @transform_12(%arg0: i32, %arg1: i32) -> (i32, i32) {
    %c0_i32 = arith.constant 0 : i32
    %c0_i32_0 = arith.constant 0 : i32
    %c0_i32_1 = arith.constant 0 : i32
    return %c0_i32, %c0_i32_0 : i32, i32
  }
  func.func @transform_13(%arg0: i32, %arg1: i32) -> (i32, i32) {
    %c0_i32 = arith.constant 0 : i32
    %c0_i32_0 = arith.constant 0 : i32
    %c0_i32_1 = arith.constant 0 : i32
    return %c0_i32, %c0_i32_0 : i32, i32
  }
  func.func @transform_14(%arg0: i32, %arg1: i32) -> (i32, i32) {
    %c0_i32 = arith.constant 0 : i32
    %c0_i32_0 = arith.constant 0 : i32
    %c0_i32_1 = arith.constant 0 : i32
    return %c0_i32, %c0_i32_0 : i32, i32
  }
  func.func @transform_15(%arg0: i32, %arg1: i32) -> (i32, i32) {
    %c0_i32 = arith.constant 0 : i32
    %c0_i32_0 = arith.constant 0 : i32
    %c0_i32_1 = arith.constant 0 : i32
    return %c0_i32, %c0_i32_0 : i32, i32
  }
  func.func @transform_16(%arg0: i32, %arg1: i32) -> (i32, i32, i32) {
    %c0_i32 = arith.constant 0 : i32
    %c0_i32_0 = arith.constant 0 : i32
    return %arg0, %c0_i32, %arg1 : i32, i32, i32
  }
}

</mosaic_0001>

<bundles_post_ra>
// kernel: tpu_custom_call.1
= control target key start
LH: loop header
LB: loop body
LE: loop exit
PB: predicated region body
PF: predicated region fallthrough
CT: control target
= control target key end

     0   :  { %s3828_s0 = inlined_call_operand.vmem [shape: f32[2,3,512], index: 0, kind: input, shape index: {}]   ;;  %s3829_s1 = inlined_call_operand.vmem [shape: f32[2,16,512], index: 1, kind: input, shape index: {}]   ;;  %s3830_s2 = inlined_call_operand.vmem [shape: f32[64,3], index: 2, kind: input, shape index: {}]   ;;  %s3831_s3 = inlined_call_operand.vmem [shape: f32[64,1], index: 3, kind: input, shape index: {}]   ;;  %s3832_s4 = inlined_call_operand.vmem [shape: bf16[32,64], index: 4, kind: input, shape index: {}]   ;;  %s3833_s5 = inlined_call_operand.vmem [shape: f32[32,1], index: 5, kind: input, shape index: {}]   ;;  %s3834_s6 = inlined_call_operand.vmem [shape: bf16[128,48], index: 6, kind: input, shape index: {}]   ;;  %s3835_s7 = inlined_call_operand.vmem [shape: f32[64,1], index: 7, kind: input, shape index: {}]   ;;  %s3836_s8 = inlined_call_operand.vmem [shape: bf16[64,64], index: 8, kind: input, shape index: {}]   ;;  %s3837_s9 = inlined_call_operand.vmem [shape: f32[64,1], index: 9, kind: input, shape index: {}]   ;;  %s3838_s10 = inlined_call_operand.vmem [shape: bf16[16,64], index: 10, kind: input, shape index: {}]   ;;  %s3839_s11 = inlined_call_operand.vmem [shape: f32[16,1], index: 11, kind: input, shape index: {}]   ;;  %s3840_s12 = inlined_call_operand.vmem [shape: bf16[64,16], index: 12, kind: input, shape index: {}]   ;;  %s3841_s13 = inlined_call_operand.vmem [shape: f32[64,1], index: 13, kind: input, shape index: {}]   ;;  %s3842_s14 = inlined_call_operand.vmem [shape: bf16[32,64], index: 14, kind: input, shape index: {}]   ;;  %s3843_s15 = inlined_call_operand.vmem [shape: f32[32,1], index: 15, kind: input, shape index: {}]   ;;  %s3844_s16 = inlined_call_operand.hbm [shape: bf16[2,32,512], index: 16, kind: output, shape index: {}]  }
   0x1   :  { %3848 = sst [smem:[#allocation9_spill]] %s3828_s0 }
   0x2   :  { %3849 = sst [smem:[#allocation10_spill]] %s3830_s2 }
   0x3   :  { %21 = vsyncpa [#allocation3], 0 }
   0x4   :  { %23 = vsyncpa [#allocation3 + $0x1], 0  ;;  %s3138_s21 = smov 0   ;;  %s3140_s22 = smov 0  }
   0x5   :  { %s3142_s23 = smov 0   ;;  %s3144_s24 = smov 0  }
   0x6   :  { %s3146_s25 = smov 0   ;;  %s3148_s26 = smov 0  }
   0x7 LB: > { %3850 = sst [smem:[#allocation5_spill]] %s3033_s23  ;;  %s2742_s27 = sadd.s32 4294967295, %s3045_s26   ;;  %s3045_s26 = sphi %s3148_s26, %s29_s26   ;;  %s3041_s25 = sphi %s3146_s25, %s3861_s25   ;;  %s3037_s24 = sphi %s3144_s24, %s3860_s24   ;;  %s3033_s23 = sphi %s3142_s23, %s3859_s23   ;;  %s3029_s22 = sphi %s3140_s22, %s3863_s22   ;;  %s3025_s21 = sphi %s3138_s21, %s3862_s21  }
   0x8   : > { %3851 = sst [smem:[#allocation6_spill]] %s3041_s25  ;;  %s2743_s28 = sadd.s32 4294967294, %s3045_s26  }
   0x9   : > { %s41_s29 = sadd.s32 1, %s3041_s25  ;;  %s400_s30 = sadd.s32 1, %s3033_s23 }
   0xa   : > { %p43_p0 = scmp.ge.s32.totalorder %s41_s29, 2  ;;  %p410_p1 = scmp.ne.s32.totalorder %s3033_s23, %s3029_s22 }
   0xb   : > { %p411_p2 = scmp.eq.s32.totalorder %s2742_s27, 1  ;;  %p416_p3 = scmp.ne.s32.totalorder %s3029_s22, %s3025_s21 }
   0xc   : > { %s3865_s29 = smov (%p43_p0, %s41_s29), 0  ;;  %p417_p5 = scmp.eq.s32.totalorder %s2743_s28, 1 }
   0xd   : > { %3852 = sst [smem:[#allocation7_spill]] %s3865_s29  ;;  %p3178_p4 = por %p411_p2, %p410_p1 }
   0xe   : > { %s395_s17 = ssub.s32 %s3041_s25, %s3865_s29  ;;  %p2746_p6 = scmp.ge.s32.totalorder %s3045_s26, 1 }
   0xf   : > { %p398_p7 = scmp.eq.s32.totalorder %s395_s17, 0  ;;  %p3185_p8 = por %p417_p5, %p416_p3 }
  0x10   : > { %p503_p9 = scmp.lt.s32.totalorder %s3045_s26, 3 }
  0x11   : > { %s3191_s19 = scalar_select %p398_p7, %s3033_s23, %s400_s30  }
  0x12   : > { %p504_p10 = pnand %p2746_p6, %p503_p9 }
  0x13   : > { %3855 = sst [smem:[#allocation8_spill]] %s3191_s19  ;;  %s3856_s2 = sld [smem:[#allocation10_spill]] (!%p504_p10)  ;;  %v3047_v1 = vmov (!%p504_p10), 2   ;;  %v3048_v2 = vmov (!%p504_p10), 1   ;;  %v3049_v5 = vmov (!%p504_p10), 0   ;;  %v984_v10 = vld [vmem:[%s3831_s3] sm:$0xff] (!%p504_p10)  ;;  %v652_v49 = vlaneseq (!%p504_p10) }
  0x14   : > { %507 = sbr.rel (%p504_p10) target bundleno = 1701 (0x6a5), region = 84  ;;  %2932 = vset.pattern.permute.xlu0 (!%p504_p10), %v3047_v1  ;;  %2931 = vset.pattern.permute.xlu1 (!%p504_p10), %v3048_v2  ;;  %v985_v11 = vld [vmem:[%s3831_s3 + $0x8] sm:$0xff] (!%p504_p10)  ;;  %v988_v13 = vld [vmem:[%s3831_s3 + $0x20] sm:$0xff] (!%p504_p10)  ;;  %v991_v14 = vld [vmem:[%s3831_s3 + $0x38] sm:$0xff] (!%p504_p10)  ;;  %p567_p11 = scmp.lt.s32.totalorder (!%p504_p10), %s3037_s24, 1  ;;  %vm1150_vm0 = vcmask (!%p504_p10), 523264  }
  0x15   : > { %1189 = vmatprep.mubr.bf16.mxu0 (!%p504_p10), %v3049_v5  ;;  %1242 = vmatprep.mubr.bf16.mxu1 (!%p504_p10), %v3049_v5  ;;  %v1117_v15 = vld [vmem:[%s3833_s5 + $0x8] sm:$0xff] (!%p504_p10)  ;;  %v1119_v16 = vld [vmem:[%s3833_s5 + $0x18] sm:$0xff] (!%p504_p10)  ;;  %v986_v17 = vld [vmem:[%s3831_s3 + $0x10] sm:$0xff] (!%p504_p10)  ;;  %v653_v53 = vshrl.u32 (!%p504_p10), %v652_v49, 7  ;;  %s3857_s19 = sld [smem:[#allocation9_spill]] (!%p504_p10)  ;;  %vm1327_vm1 = vcmask (!%p504_p10), 392192  }
  0x16   : > { %v1579_v18 = vld [vmem:[%s3835_s7 + $0x8] sm:$0xff] (!%p504_p10)  ;;  %v987_v19 = vld [vmem:[%s3831_s3 + $0x18] sm:$0xff] (!%p504_p10)  ;;  %v990_v28 = vld [vmem:[%s3831_s3 + $0x30] sm:$0xff] (!%p504_p10)  ;;  %vm2136_vm2 = vcmask (!%p504_p10), 130048   ;;  %s2838_s23 = sshll.u32 (!%p504_p10), %s3037_s24, 10  ;;  %s3050_s25 = smov (!%p504_p10), [#allocation2]  }
  0x17   : > { %v1581_v20 = vld [vmem:[%s3835_s7 + $0x18] sm:$0xff] (!%p504_p10)  ;;  %v1583_v21 = vld [vmem:[%s3835_s7 + $0x28] sm:$0xff] (!%p504_p10)  ;;  %v1116_v30 = vld [vmem:[%s3833_s5] sm:$0xff] (!%p504_p10)  ;;  %v754_v57 = vsub.s32 (!%p504_p10), 1, %v653_v53  ;;  %v758_v58 = vsub.s32 (!%p504_p10), 5, %v653_v53  ;;  %v886_v61 = vsub.s32 (!%p504_p10), 2, %v653_v53 }
  0x18   : > { %v1585_v22 = vld [vmem:[%s3835_s7 + $0x38] sm:$0xff] (!%p504_p10)  ;;  %v1715_v23 = vld [vmem:[%s3837_s9 + $0x8] sm:$0xff] (!%p504_p10)  ;;  %v1118_v32 = vld [vmem:[%s3833_s5 + $0x10] sm:$0xff] (!%p504_p10)  ;;  %v890_v62 = vsub.s32 (!%p504_p10), 6, %v653_v53 }
  0x19   : > { %v602_v0 = vld [vmem:[%s3856_s2] sm:$0xff] (!%p504_p10)  ;;  %v604_v3 = vld [vmem:[%s3856_s2 + $0x10] sm:$0xff] (!%p504_p10)  ;;  %v603_v4 = vld [vmem:[%s3856_s2 + $0x8] sm:$0xff] (!%p504_p10) }
  0x1a   : > { %853 = vperm.xlu0 (!%p504_p10), %2932, %v602_v0   ;;  %721 = vperm.xlu1 (!%p504_p10), %2931, %v602_v0   ;;  %v607_v6 = vld [vmem:[%s3856_s2 + $0x28] sm:$0xff] (!%p504_p10)  ;;  %v606_v7 = vld [vmem:[%s3856_s2 + $0x20] sm:$0xff] (!%p504_p10)  ;;  %v609_v8 = vld [vmem:[%s3856_s2 + $0x38] sm:$0xff] (!%p504_p10) }
  0x1b   : > { %v605_v9 = vld [vmem:[%s3856_s2 + $0x18] sm:$0xff]  ;;  %v608_v12 = vld [vmem:[%s3856_s2 + $0x30] sm:$0xff]  ;;  %v1719_v25 = vld [vmem:[%s3837_s9 + $0x28] sm:$0xff]  ;;  %s3346_s28 = scalar_select %p567_p11, %s3037_s24, 1 }
  0x1c   : > { %v1717_v24 = vld [vmem:[%s3837_s9 + $0x18] sm:$0xff]  ;;  %v989_v26 = vld [vmem:[%s3831_s3 + $0x28] sm:$0xff]  ;;  %v1578_v34 = vld [vmem:[%s3835_s7] sm:$0xff] }
  0x1d   : > { %v1721_v27 = vld [vmem:[%s3837_s9 + $0x38] sm:$0xff]  ;;  %v1991_v29 = vld [vmem:[%s3839_s11 + $0x8] sm:$0xff]  ;;  %v1580_v36 = vld [vmem:[%s3835_s7 + $0x10] sm:$0xff]  ;;  %s2828_s2 = sshll.u32 %s3346_s28, 4  ;;  %s2829_s30 = sshll.u32 %s3346_s28, 6 }
  0x1e   : > { %861 = vperm.xlu0 %2932, %v604_v3   ;;  %725 = vperm.xlu1 %2931, %v603_v4   ;;  %v2296_v31 = vld [vmem:[%s3841_s13 + $0x8] sm:$0xff]  ;;  %v2298_v33 = vld [vmem:[%s3841_s13 + $0x18] sm:$0xff]  ;;  %v1582_v38 = vld [vmem:[%s3835_s7 + $0x20] sm:$0xff]  ;;  %s574_s20 = scalar_lea.vmem %s3857_s19, %s2828_s2  ;;  %s563_s19 = sand.u32 1, %s3029_s22  }
  0x1f   : > { %v2300_v35 = vld [vmem:[%s3841_s13 + $0x28] sm:$0xff]  ;;  %v2302_v37 = vld [vmem:[%s3841_s13 + $0x38] sm:$0xff]  ;;  %v1584_v40 = vld [vmem:[%s3835_s7 + $0x30] sm:$0xff]  ;;  %s3772_s2 = scalar_lea.hbm %s3844_s16, %s2838_s23  ;;  %s3782_s24 = scalar_lea.sflag [#allocation3], %s563_s19 }
  0x20   : > { %v2428_v39 = vld [vmem:[%s3843_s15 + $0x8] sm:$0xff]  ;;  %v2430_v41 = vld [vmem:[%s3843_s15 + $0x18] sm:$0xff]  ;;  %v1714_v42 = vld [vmem:[%s3837_s9] sm:$0xff] }
  0x21   : > { %v1716_v43 = vld [vmem:[%s3837_s9 + $0x10] sm:$0xff]  ;;  %v1718_v44 = vld [vmem:[%s3837_s9 + $0x20] sm:$0xff]  ;;  %v589_v60 = vld [vmem:[%s574_s20 + $0x8] sm:$0x77] }
  0x22   : > { %873 = vperm.xlu0 %2932, %v607_v6   ;;  %2933 = vset.pattern.permute.xlu1 %v3047_v1  ;;  %v1720_v45 = vld [vmem:[%s3837_s9 + $0x30] sm:$0xff]  ;;  %v1990_v48 = vld [vmem:[%s3839_s11] sm:$0xff] }
  0x23   : > { %857 = vperm.xlu1 %2933, %v603_v4   ;;  %v2295_v52 = vld [vmem:[%s3841_s13] sm:$0xff]  ;;  %v2297_v56 = vld [vmem:[%s3841_s13 + $0x10] sm:$0xff] }
  0x24   : > { %v588_v59 = vld [vmem:[%s574_s20] sm:$0x77]  ;;  %s3617_s20 = scalar_lea.vmem %s3829_s1, %s2829_s30 }
  0x26   : > { %2940 = vset.pattern.permute.xlu0 %v3048_v2 }
  0x27   : > { %737 = vperm.xlu0 %2940, %v606_v7   ;;  %2934 = vset.pattern.permute.xlu1 %v3049_v5 }
  0x28   : > { %622 = vperm.xlu1 %2934, %v604_v3  }
  0x2b   : > { %749 = vperm.xlu0 %2940, %v609_v8  }
  0x2c   : > { %2935 = vset.pattern.permute.xlu1 %v3048_v2 }
  0x2d   : > { %729 = vperm.xlu1 %2935, %v604_v3  }
  0x2f   : > { %2943 = vset.pattern.permute.xlu0 %v3049_v5 }
  0x30   : > { %612 = vperm.xlu0 %2943, %v602_v0   ;;  %v2299_v0 = vld [vmem:[%s3841_s13 + $0x20] sm:$0xff] }
  0x31   : > { %733 = vperm.xlu1 %2935, %v605_v9  }
  0x34   : > { %617 = vperm.xlu0 %2943, %v603_v4   ;;  %v755_v4 = vrot.slane %v588_v59, %v754_v57 }
  0x35   : > { %2936 = vset.pattern.permute.xlu1 %v3047_v1 }
  0x36   : > { %865 = vperm.xlu1 %2936, %v605_v9  }
  0x38   : > { %627 = vperm.xlu0 %2943, %v605_v9   ;;  %v887_v9 = vrot.slane %v588_v59, %v886_v61 }
  0x3a   : > { %2937 = vset.pattern.permute.xlu1 %v3049_v5 }
  0x3b   : > { %994 = vperm.xlu1 %2937, %v984_v10   ;;  %v891_v10 = vrot.slane %v588_v59, %v890_v62 }
  0x3c   : > { %999 = vperm.xlu0 %2943, %v985_v11   ;;  %v895_v11 = vrot.slane %v589_v60, %v886_v61 }
  0x3f   : > { %632 = vperm.xlu1 %2937, %v606_v7  }
  0x40   : > { %642 = vperm.xlu0 %2943, %v608_v12  }
  0x43   : > { %637 = vperm.xlu1 %2937, %v607_v6  }
  0x44   : > { %1014 = vperm.xlu0 %2943, %v988_v13  }
  0x47   : > { %2938 = vset.pattern.permute.xlu1 %v3048_v2 }
  0x48   : > { %1029 = vperm.xlu0 %2943, %v991_v14   ;;  %741 = vperm.xlu1 %2938, %v607_v6   ;;  %v759_v6 = vrot.slane %v588_v59, %v758_v58  ;;  %v2301_v14 = vld [vmem:[%s3841_s13 + $0x30] sm:$0xff] }
  0x4c   : > { %1127 = vperm.xlu0 %2943, %v1117_v15   ;;  %2939 = vset.pattern.permute.xlu1 %v3047_v1 }
  0x4d   : > { %869 = vperm.xlu1 %2939, %v606_v7   ;;  %v763_v7 = vrot.slane %v589_v60, %v754_v57 }
  0x50   : > { %1137 = vperm.xlu0 %2943, %v1119_v16  }
  0x51   : > { %2941 = vset.pattern.permute.xlu1 %v3049_v5 }
  0x52   : > { %1004 = vperm.xlu1 %2941, %v986_v17  }
  0x54   : > { %1593 = vperm.xlu0 %2943, %v1579_v18  }
  0x56   : > { %1009 = vperm.xlu1 %2941, %v987_v19   ;;  %v3378_v19 = vrot.slane %v755_v4, %v754_v57 }
  0x58   : > { %1603 = vperm.xlu0 %2943, %v1581_v20   ;;  %v3380_v20 = vrot.slane %v759_v6, %v754_v57 }
  0x5a   : > { %647 = vperm.xlu1 %2941, %v609_v8  }
  0x5c   : > { %1613 = vperm.xlu0 %2943, %v1583_v21   ;;  %v3382_v21 = vrot.slane %v763_v7, %v754_v57 }
  0x5e   : > { %2942 = vset.pattern.permute.xlu1 %v3048_v2  ;;  %v658_v2 = vsub.s32 4, %v653_v53 }
  0x5f   : > { %745 = vperm.xlu1 %2942, %v608_v12  }
  0x60   : > { %1623 = vperm.xlu0 %2943, %v1585_v22   ;;  %v659_v16 = vrot.slane %v588_v59, %v658_v2  ;;  %v667_v18 = vrot.slane %v589_v60, %v658_v2 }
  0x63   : > { %2944 = vset.pattern.permute.xlu1 %v3047_v1  ;;  %v654_v1 = vsub.s32 0, %v653_v53 }
  0x64   : > { %1729 = vperm.xlu0 %2943, %v1715_v23   ;;  %877 = vperm.xlu1 %2944, %v608_v12   ;;  %v899_v12 = vrot.slane %v589_v60, %v890_v62 }
  0x65   : > { %v655_v15 = vrot.slane %v588_v59, %v654_v1  ;;  %v663_v17 = vrot.slane %v589_v60, %v654_v1 }
  0x68   : > { %1739 = vperm.xlu0 %2943, %v1717_v24   ;;  %881 = vperm.xlu1 %2944, %v609_v8   ;;  %v767_v8 = vrot.slane %v589_v60, %v758_v58  ;;  %v3388_v24 = vrot.slane %v887_v9, %v886_v61 }
  0x6a   : > { %v3384_v22 = vrot.slane %v767_v8, %v754_v57 }
  0x6c   : > { %1749 = vperm.xlu0 %2943, %v1719_v25   ;;  %2945 = vset.pattern.permute.xlu1 %v3049_v5  ;;  %v3390_v25 = vrot.slane %v891_v10, %v886_v61 }
  0x6d   : > { %1019 = vperm.xlu1 %2945, %v989_v26   ;;  %v3392_v26 = vrot.slane %v895_v11, %v886_v61 }
  0x70   : > { %1759 = vperm.xlu0 %2943, %v1721_v27   ;;  %v3394_v27 = vrot.slane %v899_v12, %v886_v61 }
  0x71   : > { %1024 = vperm.xlu1 %2945, %v990_v28   ;;  %v2427_v28 = vld [vmem:[%s3843_s15] sm:$0xff] }
  0x74   : > { %1999 = vperm.xlu0 %2943, %v1991_v29   ;;  %v3399_v29 = vrot.slane %v655_v15, %v654_v1 }
  0x75   : > { %1122 = vperm.xlu1 %2945, %v1116_v30   ;;  %v3401_v30 = vrot.slane %v659_v16, %v654_v1 }
  0x78   : > { %2310 = vperm.xlu0 %2943, %v2296_v31   ;;  %v3403_v31 = vrot.slane %v663_v17, %v654_v1 }
  0x79   : > { %1132 = vperm.xlu1 %2945, %v1118_v32   ;;  %v3405_v32 = vrot.slane %v667_v18, %v654_v1 }
  0x7c   : > { %2320 = vperm.xlu0 %2943, %v2298_v33  }
  0x7d   : > { %1588 = vperm.xlu1 %2945, %v1578_v34  }
  0x80   : > { %2330 = vperm.xlu0 %2943, %v2300_v35  }
  0x81   : > { %1598 = vperm.xlu1 %2945, %v1580_v36  }
  0x84   : > { %2340 = vperm.xlu0 %2943, %v2302_v37  }
  0x85   : > { %1608 = vperm.xlu1 %2945, %v1582_v38  }
  0x88   : > { %2438 = vperm.xlu0 %2943, %v2428_v39  }
  0x89   : > { %1618 = vperm.xlu1 %2945, %v1584_v40  }
  0x8c   : > { %2448 = vperm.xlu0 %2943, %v2430_v41  }
  0x8d   : > { %1724 = vperm.xlu1 %2945, %v1714_v42  }
  0x91   : > { %1734 = vperm.xlu1 %2945, %v1716_v43  }
  0x95   : > { %1744 = vperm.xlu1 %2945, %v1718_v44  }
  0x99   : > { %1754 = vperm.xlu1 %2945, %v1720_v45   ;;  %v722_v46 = vpop.permute.xlu1 %721  ;;  %v3340_v47 = vpop.permute.xlu0 %853 }
  0x9a   : > { %v788_v34 = vmul.f32 %v3378_v19, %v722_v46  ;;  %v789_v35 = vmul.f32 %v3380_v20, %v722_v46  ;;  %v790_v36 = vmul.f32 %v3382_v21, %v722_v46  ;;  %v791_v37 = vmul.f32 %v3384_v22, %v722_v46 }
  0x9b   : > { %v920_v43 = vmul.f32 %v3388_v24, %v3340_v47  ;;  %v921_v44 = vmul.f32 %v3390_v25, %v3340_v47  ;;  %v922_v45 = vmul.f32 %v3392_v26, %v3340_v47  ;;  %v923_v46 = vmul.f32 %v3394_v27, %v3340_v47 }
  0x9d   : > { %1994 = vperm.xlu1 %2945, %v1990_v48   ;;  %v3348_v50 = vpop.permute.xlu1 %725  ;;  %v3350_v51 = vpop.permute.xlu0 %861  ;;  %v2429_v48 = vld [vmem:[%s3843_s15 + $0x10] sm:$0xff] }
  0x9e   : > { %v792_v49 = vmul.f32 %v3378_v19, %v3348_v50  ;;  %v794_v53 = vmul.f32 %v3382_v21, %v3348_v50 }
  0xa1   : > { %2305 = vperm.xlu1 %2945, %v2295_v52   ;;  %v3356_v54 = vpop.permute.xlu0 %873  ;;  %v793_v52 = vmul.f32 %v3380_v20, %v3348_v50 }
  0xa2   : > { %v3361_v55 = vpop.permute.xlu1 %857 }
  0xa3   : > { %v924_v9 = vmul.f32 %v3388_v24, %v3361_v55  ;;  %v925_v10 = vmul.f32 %v3390_v25, %v3361_v55  ;;  %v926_v11 = vmul.f32 %v3392_v26, %v3361_v55  ;;  %v927_v12 = vmul.f32 %v3394_v27, %v3361_v55 }
  0xa5   : > { %2315 = vperm.xlu1 %2945, %v2297_v56   ;;  %v795_v56 = vmul.f32 %v3384_v22, %v3348_v50 }
  0xa6   : > { %v3366_v63 = vpop.permute.xlu0 %737 }
  0xa7   : > { %v3371_v3 = vpop.permute.xlu1 %622 }
  0xa9   : > { %2325 = vperm.xlu1 %2945, %v2299_v0  }
  0xaa   : > { %v3373_v13 = vpop.permute.xlu0 %749 }
  0xac   : > { %v3386_v23 = vpop.permute.xlu1 %729 }
  0xad   : > { %2335 = vperm.xlu1 %2945, %v2301_v14  }
  0xaf   : > { %v613_v33 = vpop.permute.xlu0 %612 }
  0xb0   : > { %v3411_v38 = vpop.permute.xlu1 %733  ;;  %v688_v39 = vmul.f32 %v3399_v29, %v613_v33  ;;  %v689_v40 = vmul.f32 %v3401_v30, %v613_v33  ;;  %v690_v41 = vmul.f32 %v3403_v31, %v613_v33  ;;  %v691_v42 = vmul.f32 %v3405_v32, %v613_v33 }
  0xb1   : > { %2433 = vperm.xlu1 %2945, %v2427_v28  }
  0xb2   : > { %v820_v61 = vadd.f32 %v788_v34, %v688_v39  ;;  %v822_v62 = vadd.f32 %v790_v36, %v690_v41  ;;  %v821_v1 = vadd.f32 %v789_v35, %v689_v40  ;;  %v823_v2 = vadd.f32 %v791_v37, %v691_v42 }
  0xb3   : > { %v618_v57 = vpop.permute.xlu0 %617 }
  0xb4   : > { %v692_v58 = vmul.f32 %v3399_v29, %v618_v57  ;;  %v693_v47 = vmul.f32 %v3401_v30, %v618_v57  ;;  %v694_v59 = vmul.f32 %v3403_v31, %v618_v57  ;;  %v695_v60 = vmul.f32 %v3405_v32, %v618_v57 }
  0xb5   : > { %2443 = vperm.xlu1 %2945, %v2429_v48   ;;  %v3440_v0 = vpop.permute.xlu1 %865  ;;  %v953_v14 = vadd.f32 %v921_v44, %v821_v1  ;;  %v955_v15 = vadd.f32 %v923_v46, %v823_v2  ;;  %v952_v16 = vadd.f32 %v920_v43, %v820_v61  ;;  %v954_v17 = vadd.f32 %v922_v45, %v822_v62 }
  0xb6   : > { %v824_v4 = vadd.f32 %v792_v49, %v692_v58  ;;  %v826_v6 = vadd.f32 %v794_v53, %v694_v59  ;;  %v825_v50 = vadd.f32 %v793_v52, %v693_v47  ;;  %v827_v8 = vadd.f32 %v795_v56, %v695_v60 }
  0xb7   : > { %v3442_v7 = vpop.permute.xlu0 %627  ;;  %v928_v1 = vmul.f32 %v3388_v24, %v3350_v51 }
  0xb8   : > { %v957_v28 = vadd.f32 %v925_v10, %v825_v50  ;;  %v959_v33 = vadd.f32 %v927_v12, %v827_v8  ;;  %v956_v34 = vadd.f32 %v924_v9, %v824_v4  ;;  %v958_v35 = vadd.f32 %v926_v11, %v826_v6 }
  0xb9   : > { %v929_v4 = vmul.f32 %v3390_v25, %v3350_v51  ;;  %v930_v6 = vmul.f32 %v3392_v26, %v3350_v51  ;;  %v931_v50 = vmul.f32 %v3394_v27, %v3350_v51  ;;  %v3468_v8 = vmul.f32 %v3388_v24, %v3356_v54 }
  0xba   : > { %v995_v18 = vpop.permute.xlu1 %994  ;;  %v796_v9 = vmul.f32 %v3378_v19, %v3386_v23  ;;  %v797_v10 = vmul.f32 %v3380_v20, %v3386_v23  ;;  %v798_v11 = vmul.f32 %v3382_v21, %v3386_v23  ;;  %v799_v12 = vmul.f32 %v3384_v22, %v3386_v23 }
  0xbb   : > { %v1000_v36 = vpop.permute.xlu0 %999  ;;  %v1033_v37 = vadd.f32 %v995_v18, %v953_v14  ;;  %v1035_v39 = vadd.f32 %v995_v18, %v955_v15  ;;  %v1032_v40 = vadd.f32 %v995_v18, %v952_v16  ;;  %v1034_v41 = vadd.f32 %v995_v18, %v954_v17 }
  0xbc   : > { %v1037_v42 = vadd.f32 %v1000_v36, %v957_v28  ;;  %v1039_v48 = vadd.f32 %v1000_v36, %v959_v33  ;;  %v1036_v49 = vadd.f32 %v1000_v36, %v956_v34  ;;  %v1038_v52 = vadd.f32 %v1000_v36, %v958_v35 }
  0xbd   : > { %v1065_v53 = vmax.f32 %v1033_v37, 0.0  ;;  %v1067_v55 = vmax.f32 %v1035_v39, 0.0  ;;  %v1064_v44 = vmax.f32 %v1032_v40, 0.0  ;;  %v1066_v46 = vmax.f32 %v1034_v41, 0.0 }
  0xbe   : > { %v3452_v43 = vpop.permute.xlu1 %632  ;;  %v1069_v45 = vmax.f32 %v1037_v42, 0.0  ;;  %v1071_v56 = vmax.f32 %v1039_v48, 0.0  ;;  %v1068_v57 = vmax.f32 %v1036_v49, 0.0  ;;  %v1070_v58 = vmax.f32 %v1038_v52, 0.0 }
  0xbf   : > { %v3480_v14 = vmul.f32 %v3390_v25, %v3356_v54  ;;  %v3484_v51 = vmul.f32 %v3392_v26, %v3356_v54  ;;  %v804_v15 = vmul.f32 %v3378_v19, %v3366_v63  ;;  %v805_v16 = vmul.f32 %v3380_v20, %v3366_v63 }
  0xc0   : > { %v1101_v59 = vpack.c.bf16 %v1069_v45, %v1065_v53  ;;  %v1103_v60 = vpack.c.bf16 %v1071_v56, %v1067_v55  ;;  %v1100_v61 = vpack.c.bf16 %v1068_v57, %v1064_v44  ;;  %v1102_v62 = vpack.c.bf16 %v1070_v58, %v1066_v46 }
  0xc1   : > { %v696_v17 = vmul.f32 %v3399_v29, %v3371_v3  ;;  %v697_v23 = vmul.f32 %v3401_v30, %v3371_v3  ;;  %v698_v18 = vmul.f32 %v3403_v31, %v3371_v3  ;;  %v699_v28 = vmul.f32 %v3405_v32, %v3371_v3 }
  0xc2   : > { %v3454_v47 = vpop.permute.xlu1 %637  ;;  %1157 = vmatprep.subr.bf16.mxu0 %v1101_v59  ;;  %1210 = vmatprep.subr.bf16.mxu1 %v1103_v60  ;;  %v700_v33 = vmul.f32 %v3399_v29, %v3442_v7  ;;  %v701_v34 = vmul.f32 %v3401_v30, %v3442_v7  ;;  %v702_v35 = vmul.f32 %v3403_v31, %v3442_v7 }
  0xc3   : > { %1158 = vmatpush1.bf16.msra.mxu0 %v1100_v61  ;;  %1211 = vmatpush1.bf16.msra.mxu1 %v1102_v62  ;;  %v703_v36 = vmul.f32 %v3405_v32, %v3442_v7  ;;  %v828_v39 = vadd.f32 %v796_v9, %v696_v17  ;;  %v829_v40 = vadd.f32 %v797_v10, %v697_v23 }
  0xc4   : > { %v830_v41 = vadd.f32 %v798_v11, %v698_v18  ;;  %v831_v42 = vadd.f32 %v799_v12, %v699_v28  ;;  %v800_v3 = vmul.f32 %v3378_v19, %v3411_v38  ;;  %v801_v48 = vmul.f32 %v3380_v20, %v3411_v38 }
  0xc5   : > { %v802_v49 = vmul.f32 %v3382_v21, %v3411_v38  ;;  %v803_v52 = vmul.f32 %v3384_v22, %v3411_v38  ;;  %v806_v7 = vmul.f32 %v3382_v21, %v3366_v63  ;;  %v807_v53 = vmul.f32 %v3384_v22, %v3366_v63 }
  0xc6   : > { %v704_v55 = vmul.f32 %v3399_v29, %v3452_v43  ;;  %v705_v44 = vmul.f32 %v3401_v30, %v3452_v43  ;;  %v832_v46 = vadd.f32 %v800_v3, %v700_v33  ;;  %v833_v45 = vadd.f32 %v801_v48, %v701_v34 }
  0xc7   : > { %v3458_v2 = vpop.permute.xlu1 %741  ;;  %v834_v56 = vadd.f32 %v802_v49, %v702_v35  ;;  %v835_v57 = vadd.f32 %v803_v52, %v703_v36  ;;  %v960_v59 = vadd.f32 %v928_v1, %v828_v39  ;;  %v961_v60 = vadd.f32 %v929_v4, %v829_v40 }
  0xc8   : > { %v962_v38 = vadd.f32 %v930_v6, %v830_v41  ;;  %v963_v61 = vadd.f32 %v931_v50, %v831_v42  ;;  %v932_v62 = vmul.f32 %v3388_v24, %v3440_v0  ;;  %v933_v63 = vmul.f32 %v3390_v25, %v3440_v0 }
  0xc9   : > { %v934_v9 = vmul.f32 %v3392_v26, %v3440_v0  ;;  %v935_v10 = vmul.f32 %v3394_v27, %v3440_v0  ;;  %v706_v11 = vmul.f32 %v3403_v31, %v3452_v43  ;;  %v707_v1 = vmul.f32 %v3405_v32, %v3452_v43 }
  0xca   : > { %v836_v4 = vadd.f32 %v804_v15, %v704_v55  ;;  %v837_v6 = vadd.f32 %v805_v16, %v705_v44  ;;  %v964_v50 = vadd.f32 %v932_v62, %v832_v46  ;;  %v965_v12 = vadd.f32 %v933_v63, %v833_v45 }
  0xcb   : > { %v966_v17 = vadd.f32 %v934_v9, %v834_v56  ;;  %v967_v23 = vadd.f32 %v935_v10, %v835_v57  ;;  %v838_v41 = vadd.f32 %v806_v7, %v706_v11  ;;  %v839_v56 = vadd.f32 %v807_v53, %v707_v1  ;;  %v643_v57 = vpop.permute.xlu0 %642 }
  0xcc   : > { %v870_v37 = vpop.permute.xlu1 %869  ;;  %v708_v7 = vmul.f32 %v3399_v29, %v3454_v47  ;;  %v808_v63 = vmul.f32 %v3378_v19, %v3458_v2  ;;  %v809_v9 = vmul.f32 %v3380_v20, %v3458_v2  ;;  %v810_v53 = vmul.f32 %v3382_v21, %v3458_v2 }
  0xcd   : > { %v936_v42 = vmul.f32 %v3388_v24, %v870_v37  ;;  %v937_v43 = vmul.f32 %v3390_v25, %v870_v37  ;;  %v939_v15 = vmul.f32 %v3394_v27, %v870_v37  ;;  %v811_v10 = vmul.f32 %v3384_v22, %v3458_v2 }
  0xce   : > { %v816_v2 = vmul.f32 %v3378_v19, %v3373_v13 }
  0xcf   : > { %v968_v11 = vadd.f32 %v936_v42, %v836_v4  ;;  %v969_v1 = vadd.f32 %v937_v43, %v837_v6  ;;  %v817_v4 = vmul.f32 %v3380_v20, %v3373_v13  ;;  %v818_v6 = vmul.f32 %v3382_v21, %v3373_v13 }
  0xd1   : > { %v1005_v58 = vpop.permute.xlu1 %1004 }
  0xd2   : > { %v1040_v18 = vadd.f32 %v1005_v58, %v960_v59  ;;  %v1041_v28 = vadd.f32 %v1005_v58, %v961_v60  ;;  %v1042_v33 = vadd.f32 %v1005_v58, %v962_v38  ;;  %v1043_v34 = vadd.f32 %v1005_v58, %v963_v61 }
  0xd3   : > { %v709_v58 = vmul.f32 %v3401_v30, %v3454_v47  ;;  %v938_v59 = vmul.f32 %v3392_v26, %v870_v37  ;;  %v710_v37 = vmul.f32 %v3403_v31, %v3454_v47 }
  0xd4   : > { %v1073_v55 = vmax.f32 %v1041_v28, 0.0  ;;  %v1075_v44 = vmax.f32 %v1043_v34, 0.0  ;;  %v1072_v46 = vmax.f32 %v1040_v18, 0.0  ;;  %v1074_v45 = vmax.f32 %v1042_v33, 0.0  ;;  %v1015_v28 = vpop.permute.xlu0 %1014 }
  0xd5   : > { %v1010_v35 = vpop.permute.xlu1 %1009  ;;  %v943_v18 = vmul.f32 %v3394_v27, %v3356_v54  ;;  %v840_v33 = vadd.f32 %v808_v63, %v708_v7  ;;  %v841_v34 = vadd.f32 %v809_v9, %v709_v58 }
  0xd6   : > { %v1044_v36 = vadd.f32 %v1010_v35, %v964_v50  ;;  %v1045_v39 = vadd.f32 %v1010_v35, %v965_v12  ;;  %v1046_v0 = vadd.f32 %v1010_v35, %v966_v17  ;;  %v1047_v40 = vadd.f32 %v1010_v35, %v967_v23 }
  0xd7   : > { %v971_v50 = vadd.f32 %v939_v15, %v839_v56  ;;  %v711_v12 = vmul.f32 %v3405_v32, %v3454_v47  ;;  %v970_v17 = vadd.f32 %v938_v59, %v838_v41  ;;  %v842_v47 = vadd.f32 %v810_v53, %v710_v37 }
  0xd8   : > { %v1077_v16 = vmax.f32 %v1045_v39, 0.0  ;;  %v1079_v3 = vmax.f32 %v1047_v40, 0.0  ;;  %v1076_v48 = vmax.f32 %v1044_v36, 0.0  ;;  %v1078_v49 = vmax.f32 %v1046_v0, 0.0 }
  0xd9   : > { %v648_v52 = vpop.permute.xlu1 %647  ;;  %v843_v35 = vadd.f32 %v811_v10, %v711_v12  ;;  %v819_v36 = vmul.f32 %v3384_v22, %v3373_v13  ;;  %v3564_v39 = vadd.f32 %v1015_v28, %v969_v1  ;;  %v3566_v54 = vadd.f32 %v1015_v28, %v971_v50  ;;  %v1030_v10 = vpop.permute.xlu0 %1029 }
  0xda   : > { %v1105_v60 = vpack.c.bf16 %v1077_v16, %v1073_v55  ;;  %v1107_v38 = vpack.c.bf16 %v1079_v3, %v1075_v44  ;;  %v1104_v61 = vpack.c.bf16 %v1076_v48, %v1072_v46  ;;  %v1106_v62 = vpack.c.bf16 %v1078_v49, %v1074_v45 }
  0xdb   : > { %v3568_v0 = vadd.f32 %v1015_v28, %v968_v11  ;;  %v716_v40 = vmul.f32 %v3399_v29, %v648_v52  ;;  %v717_v41 = vmul.f32 %v3401_v30, %v648_v52  ;;  %v719_v42 = vmul.f32 %v3405_v32, %v648_v52 }
  0xdc   : > { %1159 = vmatprep.subr.bf16.mxu0 %v1105_v60  ;;  %1212 = vmatprep.subr.bf16.mxu1 %v1107_v38  ;;  %v3573_v43 = vadd.f32 %v1015_v28, %v970_v17  ;;  %v712_v15 = vmul.f32 %v3399_v29, %v643_v57  ;;  %v713_v16 = vmul.f32 %v3401_v30, %v643_v57  ;;  %v1081_v56 = vmax.f32 %v3564_v39, 0.0 }
  0xdd   : > { %1160 = vmatpush1.bf16.msra.mxu0 %v1104_v61  ;;  %1213 = vmatpush1.bf16.msra.mxu1 %v1106_v62  ;;  %v714_v13 = vmul.f32 %v3403_v31, %v643_v57  ;;  %v715_v3 = vmul.f32 %v3405_v32, %v643_v57  ;;  %v972_v49 = vadd.f32 %v3468_v8, %v840_v33  ;;  %v1083_v29 = vmax.f32 %v3566_v54, 0.0 }
  0xde   : > { %v746_v23 = vpop.permute.xlu1 %745  ;;  %v973_v55 = vadd.f32 %v3480_v14, %v841_v34  ;;  %v974_v44 = vadd.f32 %v3484_v51, %v842_v47  ;;  %v975_v46 = vadd.f32 %v943_v18, %v843_v35  ;;  %v718_v45 = vmul.f32 %v3403_v31, %v648_v52 }
  0xdf   : > { %v1080_v30 = vmax.f32 %v3568_v0, 0.0  ;;  %v848_v7 = vadd.f32 %v816_v2, %v716_v40  ;;  %v849_v58 = vadd.f32 %v817_v4, %v717_v41  ;;  %v851_v59 = vadd.f32 %v819_v36, %v719_v42 }
  0xe0   : > { %v1082_v32 = vmax.f32 %v3573_v43, 0.0  ;;  %v812_v8 = vmul.f32 %v3378_v19, %v746_v23  ;;  %v813_v14 = vmul.f32 %v3380_v20, %v746_v23  ;;  %v814_v51 = vmul.f32 %v3382_v21, %v746_v23 }
  0xe1   : > { %v815_v57 = vmul.f32 %v3384_v22, %v746_v23  ;;  %v850_v62 = vadd.f32 %v818_v6, %v718_v45 }
  0xe2   : > { %v844_v11 = vadd.f32 %v812_v8, %v712_v15  ;;  %v845_v1 = vadd.f32 %v813_v14, %v713_v16  ;;  %v846_v50 = vadd.f32 %v814_v51, %v714_v13 }
  0xe3   : > { %v878_v48 = vpop.permute.xlu1 %877  ;;  %v847_v37 = vadd.f32 %v815_v57, %v715_v3 }
  0xe4   : > { %v944_v63 = vmul.f32 %v3388_v24, %v878_v48  ;;  %v945_v19 = vmul.f32 %v3390_v25, %v878_v48  ;;  %v946_v20 = vmul.f32 %v3392_v26, %v878_v48  ;;  %v947_v21 = vmul.f32 %v3394_v27, %v878_v48 }
  0xe6   : > { %v977_v28 = vadd.f32 %v945_v19, %v845_v1  ;;  %v979_v33 = vadd.f32 %v947_v21, %v847_v37 }
  0xe7   : > { %v882_v31 = vpop.permute.xlu1 %881 }
  0xe8   : > { %v948_v52 = vmul.f32 %v3388_v24, %v882_v31  ;;  %v949_v60 = vmul.f32 %v3390_v25, %v882_v31  ;;  %v950_v38 = vmul.f32 %v3392_v26, %v882_v31  ;;  %v951_v61 = vmul.f32 %v3394_v27, %v882_v31 }
  0xe9   : > { %v976_v26 = vadd.f32 %v944_v63, %v844_v11  ;;  %v978_v27 = vadd.f32 %v946_v20, %v846_v50 }
  0xea   : > { %v980_v9 = vadd.f32 %v948_v52, %v848_v7  ;;  %v981_v22 = vadd.f32 %v949_v60, %v849_v58  ;;  %v983_v53 = vadd.f32 %v951_v61, %v851_v59  ;;  %v982_v12 = vadd.f32 %v950_v38, %v850_v62 }
  0xec   : > { %v1020_v17 = vpop.permute.xlu1 %1019  ;;  %v1061_v23 = vadd.f32 %v1030_v10, %v981_v22  ;;  %v1063_v18 = vadd.f32 %v1030_v10, %v983_v53  ;;  %v1060_v2 = vadd.f32 %v1030_v10, %v980_v9  ;;  %v1062_v41 = vadd.f32 %v1030_v10, %v982_v12 }
  0xed   : > { %v1052_v24 = vadd.f32 %v1020_v17, %v972_v49  ;;  %v1053_v4 = vadd.f32 %v1020_v17, %v973_v55  ;;  %v1054_v25 = vadd.f32 %v1020_v17, %v974_v44  ;;  %v1055_v6 = vadd.f32 %v1020_v17, %v975_v46 }
  0xee   : > { %v1093_v54 = vmax.f32 %v1061_v23, 0.0  ;;  %v1095_v0 = vmax.f32 %v1063_v18, 0.0  ;;  %v1092_v40 = vmax.f32 %v1060_v2, 0.0  ;;  %v1094_v7 = vmax.f32 %v1062_v41, 0.0 }
  0xef   : > { %v1085_v34 = vmax.f32 %v1053_v4, 0.0  ;;  %v1087_v47 = vmax.f32 %v1055_v6, 0.0  ;;  %v1084_v35 = vmax.f32 %v1052_v24, 0.0  ;;  %v1086_v36 = vmax.f32 %v1054_v25, 0.0  ;;  %v591_v6 = vld [vmem:[%s3617_s20 + $0x8] sm:$0xff] }
  0xf0   : > { %v1025_v39 = vpop.permute.xlu1 %1024 }
  0xf1   : > { %v1056_v42 = vadd.f32 %v1025_v39, %v976_v26  ;;  %v1057_v43 = vadd.f32 %v1025_v39, %v977_v28  ;;  %v1058_v15 = vadd.f32 %v1025_v39, %v978_v27  ;;  %v1059_v16 = vadd.f32 %v1025_v39, %v979_v33  ;;  %v597_v39 = vld [vmem:[%s3617_s20 + $0x38] sm:$0xff] }
  0xf2   : > { %v1109_v13 = vpack.c.bf16 %v1085_v34, %v1081_v56  ;;  %v1111_v3 = vpack.c.bf16 %v1087_v47, %v1083_v29  ;;  %v1108_v48 = vpack.c.bf16 %v1084_v35, %v1080_v30  ;;  %v1110_v49 = vpack.c.bf16 %v1086_v36, %v1082_v32  ;;  %v2946_v56 = vld [vmem:[%s3832_s4] sm:$0xff]   ;;  %v2947_v29 = vld [vmem:[%s3832_s4 + $0x8] sm:$0xff]   ;;  %v1128_v30 = vpop.permute.xlu0 %1127  ;;  %v593_v36 = vld [vmem:[%s3617_s20 + $0x18] sm:$0xff] }
  0xf3   : > { %v1089_v55 = vmax.f32 %v1057_v43, 0.0  ;;  %v1091_v44 = vmax.f32 %v1059_v16, 0.0  ;;  %v1088_v46 = vmax.f32 %v1056_v42, 0.0  ;;  %v1090_v45 = vmax.f32 %v1058_v15, 0.0  ;;  %v595_v35 = vld [vmem:[%s3617_s20 + $0x28] sm:$0xff]  ;;  %v590_v15 = vld [vmem:[%s3617_s20] sm:$0xff] }
  0xf4   : > { %1161 = vmatprep.subr.bf16.mxu0 %v1109_v13  ;;  %1214 = vmatprep.subr.bf16.mxu1 %v1111_v3  ;;  %v1123_v32 = vpop.permute.xlu1 %1122  ;;  %v599_v3 = vpack.c.bf16 %v595_v35, %v591_v6 }
  0xf5   : > { %1162 = vmatpush1.bf16.msra.mxu0 %v1108_v48  ;;  %1215 = vmatpush1.bf16.msra.mxu1 %v1110_v49  ;;  %v1113_v58 = vpack.c.bf16 %v1093_v54, %v1089_v55  ;;  %v1115_v59 = vpack.c.bf16 %v1095_v0, %v1091_v44  ;;  %v1112_v8 = vpack.c.bf16 %v1092_v40, %v1088_v46  ;;  %v594_v49 = vld [vmem:[%s3617_s20 + $0x20] sm:$0xff]  ;;  %v592_v55 = vld [vmem:[%s3617_s20 + $0x10] sm:$0xff] }
  0xf6   : > { %v1114_v14 = vpack.c.bf16 %v1094_v7, %v1090_v45  ;;  %v1138_v12 = vpop.permute.xlu0 %1137  ;;  %v601_v48 = vpack.c.bf16 %v597_v39, %v593_v36  ;;  %v596_v44 = vld [vmem:[%s3617_s20 + $0x30] sm:$0xff]  ;;  %v598_v46 = vpack.c.bf16 %v594_v49, %v590_v15  ;;  %v2948_v7 = vld [vmem:[%s3834_s6] sm:$0xff]   ;;  %s2747_s20 = sshll.u32 %s563_s19, 6 }
  0xf7   : > { %1163 = vmatprep.subr.bf16.mxu0 %v1113_v58  ;;  %1216 = vmatprep.subr.bf16.mxu1 %v1115_v59  ;;  %v600_v45 = vpack.c.bf16 %v596_v44, %v592_v55  ;;  %v2949_v58 = vld [vmem:[%s3834_s6 + $0x8] sm:$0xff]   ;;  %v2950_v59 = vld [vmem:[%s3834_s6 + $0x10] sm:$0xff]   ;;  %s3761_s28 = scalar_lea.vmem [#allocation2], %s2747_s20  ;;  %s2971_s20 = sshll.u32 %s3050_s25, 4  ;;  %s2972_s20 = int_to_ptr.vmem [resolvable:$false] %s2971_s20 }
  0xf8   : > { %v1133_v17 = vpop.permute.xlu1 %1132  ;;  %s2645_s27 = sshll.u32 %s3761_s28, 4  ;;  %s2973_s23 = scalar_lea.vmem %s2972_s20, 2048  ;;  %s3774_s27 = int_to_ptr.vmem [resolvable:$true] %s2645_s27 }
  0xf9   : > { %1164 = vmatpush1.bf16.msra.mxu0 %v1112_v8  ;;  %1217 = vmatpush1.bf16.msra.mxu1 %v1114_v14  ;;  %v2951_v8 = vld [vmem:[%s3834_s6 + $0x18] sm:$0xff]   ;;  %v2952_v14 = vld [vmem:[%s3834_s6 + $0x20] sm:$0xff]   ;;  %s2967_s30 = scalar_lea.vmem %s3774_s27, 1024  ;;  %p2974_p1 = scmp.lt.s32.totalorder %s3774_s27, %s2972_s20 }
  0xfa   : > { %p2968_p12 = scmp.ne.s32.totalorder %s3774_s27, %s2967_s30  ;;  %p2975_p2 = scmp.lt.s32.totalorder %s2973_s23, %s2967_s30 }
  0xfc   : > { %2754 = vmatmul.mubr.msk.bf16.vlgmr.msra.gmra.mrb[0].mxu0 %vm1150_vm0, %v2946_v56  ;;  %2756 = vmatmul.mubr.msk.bf16.vlgmr.msra.gmra.mrb[0].mxu1 %vm1150_vm0, %v2946_v56  ;;  %v2953_v56 = vld [vmem:[%s3834_s6 + $0x28] sm:$0xff]   ;;  %p2969_p13 = pnand %p2968_p12, %p3178_p4  ;;  %p2976_p3 = por %p2975_p2, %p2974_p1 }
  0xfd   : > { %1199 = vmatprep.mubr.bf16.mxu0 %v3049_v5  ;;  %1252 = vmatprep.mubr.bf16.mxu1 %v3049_v5 }
  0xfe   : > { %p2970_p0 = pneg %p2969_p13 }
 0x100   : > { %p2977_p5 = pnand %p2976_p3, %p2970_p0 }
 0x104   : > { %2755 = vmatmul.mubr.msk.bf16.gmra.mrb[4].mxu0 %vm1150_vm0, %v2947_v29  ;;  %2757 = vmatmul.mubr.msk.bf16.gmra.mrb[4].mxu1 %vm1150_vm0, %v2947_v29  ;;  %v2954_v29 = vld [vmem:[%s3834_s6 + $0x30] sm:$0xff]  }
 0x105   : > { %1384 = vmatprep.mubr.bf16.mxu0 %v3049_v5  ;;  %1497 = vmatprep.mubr.bf16.mxu1 %v3049_v5 }
 0x1cf   : > { %v1191_v51 = vpop.f32.mrb[0].mxu0  ;;  %v1244_v57 = vpop.f32.mrb[0].mxu1 }
 0x1d0   : > { %v1193_v31 = vpop.f32.mrb[1].mxu0  ;;  %v1246_v52 = vpop.f32.mrb[1].mxu1  ;;  %v1192_v61 = vadd.f32 %v1191_v51, %v1123_v32  ;;  %v1245_v62 = vadd.f32 %v1244_v57, %v1123_v32 }
 0x1d1   : > { %v1195_v60 = vpop.f32.mrb[2].mxu0  ;;  %v1248_v38 = vpop.f32.mrb[2].mxu1  ;;  %v1194_v9 = vadd.f32 %v1193_v31, %v1123_v32  ;;  %v1247_v22 = vadd.f32 %v1246_v52, %v1123_v32 }
 0x1d2   : > { %v1196_v63 = vadd.f32 %v1195_v60, %v1128_v30  ;;  %v1249_v19 = vadd.f32 %v1248_v38, %v1128_v30  ;;  %v1197_v20 = vpop.f32.mrb[3].mxu0  ;;  %v1250_v21 = vpop.f32.mrb[3].mxu1 }
 0x1d3   : > { %v1198_v53 = vadd.f32 %v1197_v20, %v1128_v30  ;;  %v1251_v10 = vadd.f32 %v1250_v21, %v1128_v30  ;;  %v2955_v30 = vld [vmem:[%s3834_s6 + $0x38] sm:$0xff]   ;;  %v1594_v32 = vpop.permute.xlu0 %1593  ;;  %v1589_v51 = vpop.permute.xlu1 %1588 }
 0x1d4   : > { %v1263_v11 = vpack.c.bf16 %v1196_v63, %v1192_v61  ;;  %v1265_v1 = vpack.c.bf16 %v1249_v19, %v1245_v62 }
 0x1d5   : > { %v1264_v50 = vpack.c.bf16 %v1198_v53, %v1194_v9  ;;  %v1266_v37 = vpack.c.bf16 %v1251_v10, %v1247_v22 }
 0x1d7   : > { %v1201_v23 = vpop.f32.mrb[4].mxu0  ;;  %v1254_v18 = vpop.f32.mrb[4].mxu1  ;;  %1352 = vmatprep.subr.bf16.mxu0 %v1264_v50  ;;  %1465 = vmatprep.subr.bf16.mxu1 %v1266_v37 }
 0x1d8   : > { %v1203_v2 = vpop.f32.mrb[5].mxu0  ;;  %v1256_v24 = vpop.f32.mrb[5].mxu1  ;;  %1353 = vmatpush1.bf16.msra.mxu0 %v1263_v11  ;;  %1466 = vmatpush1.bf16.msra.mxu1 %v1265_v1  ;;  %v1202_v26 = vadd.f32 %v1201_v23, %v1133_v17  ;;  %v1255_v28 = vadd.f32 %v1254_v18, %v1133_v17 }
 0x1d9   : > { %v1205_v4 = vpop.f32.mrb[6].mxu0  ;;  %v1258_v25 = vpop.f32.mrb[6].mxu1  ;;  %v1204_v54 = vadd.f32 %v1203_v2, %v1133_v17  ;;  %v1257_v0 = vadd.f32 %v1256_v24, %v1133_v17 }
 0x1da   : > { %v1206_v27 = vadd.f32 %v1205_v4, %v1138_v12  ;;  %v1259_v33 = vadd.f32 %v1258_v25, %v1138_v12  ;;  %v1207_v34 = vpop.f32.mrb[7].mxu0  ;;  %v1260_v47 = vpop.f32.mrb[7].mxu1 }
 0x1db   : > { %v1208_v40 = vadd.f32 %v1207_v34, %v1138_v12  ;;  %v1261_v41 = vadd.f32 %v1260_v47, %v1138_v12  ;;  %v1604_v24 = vpop.permute.xlu0 %1603  ;;  %v1599_v4 = vpop.permute.xlu1 %1598 }
 0x1dc   : > { %v1267_v42 = vpack.c.bf16 %v1206_v27, %v1202_v26  ;;  %v1269_v43 = vpack.c.bf16 %v1259_v33, %v1255_v28 }
 0x1dd   : > { %v1268_v16 = vpack.c.bf16 %v1208_v40, %v1204_v54  ;;  %v1270_v13 = vpack.c.bf16 %v1261_v41, %v1257_v0 }
 0x1df   : > { %1354 = vmatprep.subr.bf16.mxu0 %v1268_v16  ;;  %1467 = vmatprep.subr.bf16.mxu1 %v1270_v13 }
 0x1e0   : > { %1355 = vmatpush1.bf16.msra.mxu0 %v1267_v42  ;;  %1468 = vmatpush1.bf16.msra.mxu1 %v1269_v43 }
 0x1e1   : > { %1356 = vmatprep.subr.bf16.mxu0 %v599_v3  ;;  %1469 = vmatprep.subr.bf16.mxu1 %v601_v48 }
 0x1e4   : > { %1357 = vmatpush1.bf16.msra.mxu0 %v598_v46  ;;  %1470 = vmatpush1.bf16.msra.mxu1 %v600_v45 }
 0x1e7   : > { %2766 = vmatmul.mubr.msk.bf16.vlgmr.msra.gmra.mrb[8].mxu0 %vm1327_vm1, %v2948_v7  ;;  %2774 = vmatmul.mubr.msk.bf16.vlgmr.msra.gmra.mrb[8].mxu1 %vm1327_vm1, %v2948_v7 }
 0x1e8   : > { %1394 = vmatprep.mubr.bf16.mxu0 %v3049_v5  ;;  %1507 = vmatprep.mubr.bf16.mxu1 %v3049_v5 }
 0x1ef   : > { %2767 = vmatmul.mubr.msk.bf16.gmra.mrb[12].mxu0 %vm1327_vm1, %v2949_v58  ;;  %2775 = vmatmul.mubr.msk.bf16.gmra.mrb[12].mxu1 %vm1327_vm1, %v2949_v58  ;;  %v1614_v58 = vpop.permute.xlu0 %1613 }
 0x1f0   : > { %1404 = vmatprep.mubr.bf16.mxu0 %v3049_v5  ;;  %1517 = vmatprep.mubr.bf16.mxu1 %v3049_v5 }
 0x1f7   : > { %2768 = vmatmul.mubr.msk.bf16.gmra.mrb[16].mxu0 %vm1327_vm1, %v2950_v59  ;;  %2776 = vmatmul.mubr.msk.bf16.gmra.mrb[16].mxu1 %vm1327_vm1, %v2950_v59  ;;  %v1609_v59 = vpop.permute.xlu1 %1608 }
 0x1f8   : > { %1414 = vmatprep.mubr.bf16.mxu0 %v3049_v5  ;;  %1527 = vmatprep.mubr.bf16.mxu1 %v3049_v5 }
 0x1ff   : > { %2769 = vmatmul.mubr.msk.bf16.gmra.mrb[20].mxu0 %vm1327_vm1, %v2951_v8  ;;  %2777 = vmatmul.mubr.msk.bf16.gmra.mrb[20].mxu1 %vm1327_vm1, %v2951_v8 }
 0x200   : > { %1424 = vmatprep.mubr.bf16.mxu0 %v3049_v5  ;;  %1537 = vmatprep.mubr.bf16.mxu1 %v3049_v5 }
 0x207   : > { %2770 = vmatmul.mubr.msk.bf16.gmra.mrb[24].mxu0 %vm1327_vm1, %v2952_v14  ;;  %2778 = vmatmul.mubr.msk.bf16.gmra.mrb[24].mxu1 %vm1327_vm1, %v2952_v14 }
 0x208   : > { %1434 = vmatprep.mubr.bf16.mxu0 %v3049_v5  ;;  %1547 = vmatprep.mubr.bf16.mxu1 %v3049_v5 }
 0x20f   : > { %2771 = vmatmul.mubr.msk.bf16.gmra.mrb[28].mxu0 %vm1327_vm1, %v2953_v56  ;;  %2779 = vmatmul.mubr.msk.bf16.gmra.mrb[28].mxu1 %vm1327_vm1, %v2953_v56 }
 0x210   : > { %1444 = vmatprep.mubr.bf16.mxu0 %v3049_v5  ;;  %1557 = vmatprep.mubr.bf16.mxu1 %v3049_v5 }
 0x217   : > { %2772 = vmatmul.mubr.msk.bf16.gmra.mrb[32].mxu0 %vm1327_vm1, %v2954_v29  ;;  %2780 = vmatmul.mubr.msk.bf16.gmra.mrb[32].mxu1 %vm1327_vm1, %v2954_v29 }
 0x218   : > { %1454 = vmatprep.mubr.bf16.mxu0 %v3049_v5  ;;  %1567 = vmatprep.mubr.bf16.mxu1 %v3049_v5 }
 0x21f   : > { %2773 = vmatmul.mubr.msk.bf16.gmra.mrb[36].mxu0 %vm1327_vm1, %v2955_v30  ;;  %2781 = vmatmul.mubr.msk.bf16.gmra.mrb[36].mxu1 %vm1327_vm1, %v2955_v30 }
 0x220   : > { %1826 = vmatprep.mubr.bf16.mxu0 %v3049_v5  ;;  %1899 = vmatprep.mubr.bf16.mxu1 %v3049_v5 }
 0x2ba   : > { %v1386_v57 = vpop.f32.mrb[8].mxu0  ;;  %v1499_v31 = vpop.f32.mrb[8].mxu1 }
 0x2bb   : > { %v1626_v52 = vadd.f32 %v1589_v51, %v1386_v57  ;;  %v1628_v60 = vadd.f32 %v1589_v51, %v1499_v31  ;;  %v1388_v38 = vpop.f32.mrb[9].mxu0  ;;  %v1501_v61 = vpop.f32.mrb[9].mxu1 }
 0x2bc   : > { %v1627_v62 = vadd.f32 %v1589_v51, %v1388_v38  ;;  %v1629_v63 = vadd.f32 %v1589_v51, %v1501_v61  ;;  %v1390_v19 = vpop.f32.mrb[10].mxu0  ;;  %v1503_v20 = vpop.f32.mrb[10].mxu1 }
 0x2bd   : > { %v1630_v21 = vadd.f32 %v1594_v32, %v1390_v19  ;;  %v1632_v9 = vadd.f32 %v1594_v32, %v1503_v20  ;;  %v1392_v22 = vpop.f32.mrb[11].mxu0  ;;  %v1505_v53 = vpop.f32.mrb[11].mxu1  ;;  %v1658_v1 = vmax.f32 %v1626_v52, 0.0  ;;  %v1660_v50 = vmax.f32 %v1628_v60, 0.0 }
 0x2be   : > { %v1631_v10 = vadd.f32 %v1594_v32, %v1392_v22  ;;  %v1633_v11 = vadd.f32 %v1594_v32, %v1505_v53  ;;  %v1659_v17 = vmax.f32 %v1627_v62, 0.0  ;;  %v1661_v23 = vmax.f32 %v1629_v63, 0.0 }
 0x2bf   : > { %v1662_v37 = vmax.f32 %v1630_v21, 0.0  ;;  %v1664_v12 = vmax.f32 %v1632_v9, 0.0 }
 0x2c0   : > { %v1663_v18 = vmax.f32 %v1631_v10, 0.0  ;;  %v1665_v2 = vmax.f32 %v1633_v11, 0.0 }
 0x2c1   : > { %v1698_v25 = vpack.c.bf16 %v1662_v37, %v1658_v1  ;;  %v1700_v6 = vpack.c.bf16 %v1664_v12, %v1660_v50 }
 0x2c2   : > { %v1699_v26 = vpack.c.bf16 %v1663_v18, %v1659_v17  ;;  %v1701_v28 = vpack.c.bf16 %v1665_v2, %v1661_v23  ;;  %v1396_v27 = vpop.f32.mrb[12].mxu0  ;;  %v1509_v33 = vpop.f32.mrb[12].mxu1 }
 0x2c3   : > { %v1634_v34 = vadd.f32 %v1599_v4, %v1396_v27  ;;  %v1636_v47 = vadd.f32 %v1599_v4, %v1509_v33  ;;  %v1398_v35 = vpop.f32.mrb[13].mxu0  ;;  %v1511_v36 = vpop.f32.mrb[13].mxu1 }
 0x2c4   : > { %v1635_v39 = vadd.f32 %v1599_v4, %v1398_v35  ;;  %v1637_v54 = vadd.f32 %v1599_v4, %v1511_v36  ;;  %v1400_v0 = vpop.f32.mrb[14].mxu0  ;;  %v1513_v40 = vpop.f32.mrb[14].mxu1  ;;  %1794 = vmatprep.subr.bf16.mxu0 %v1699_v26  ;;  %1867 = vmatprep.subr.bf16.mxu1 %v1701_v28 }
 0x2c5   : > { %v1638_v41 = vadd.f32 %v1604_v24, %v1400_v0  ;;  %v1640_v42 = vadd.f32 %v1604_v24, %v1513_v40  ;;  %v1402_v43 = vpop.f32.mrb[15].mxu0  ;;  %v1515_v15 = vpop.f32.mrb[15].mxu1  ;;  %1795 = vmatpush1.bf16.msra.mxu0 %v1698_v25  ;;  %1868 = vmatpush1.bf16.msra.mxu1 %v1700_v6  ;;  %v1666_v3 = vmax.f32 %v1634_v34, 0.0  ;;  %v1668_v48 = vmax.f32 %v1636_v47, 0.0 }
 0x2c6   : > { %v1639_v16 = vadd.f32 %v1604_v24, %v1402_v43  ;;  %v1641_v13 = vadd.f32 %v1604_v24, %v1515_v15  ;;  %v1667_v44 = vmax.f32 %v1635_v39, 0.0  ;;  %v1669_v46 = vmax.f32 %v1637_v54, 0.0  ;;  %v1624_v23 = vpop.permute.xlu0 %1623  ;;  %v1619_v18 = vpop.permute.xlu1 %1618 }
 0x2c7   : > { %v1670_v49 = vmax.f32 %v1638_v41, 0.0  ;;  %v1672_v55 = vmax.f32 %v1640_v42, 0.0 }
 0x2c8   : > { %v1671_v45 = vmax.f32 %v1639_v16, 0.0  ;;  %v1673_v7 = vmax.f32 %v1641_v13, 0.0 }
 0x2c9   : > { %v1702_v8 = vpack.c.bf16 %v1670_v49, %v1666_v3  ;;  %v1704_v14 = vpack.c.bf16 %v1672_v55, %v1668_v48 }
 0x2ca   : > { %v1703_v56 = vpack.c.bf16 %v1671_v45, %v1667_v44  ;;  %v1705_v29 = vpack.c.bf16 %v1673_v7, %v1669_v46  ;;  %v1406_v30 = vpop.f32.mrb[16].mxu0  ;;  %v1519_v32 = vpop.f32.mrb[16].mxu1 }
 0x2cb   : > { %v1642_v51 = vadd.f32 %v1609_v59, %v1406_v30  ;;  %v1644_v57 = vadd.f32 %v1609_v59, %v1519_v32  ;;  %v1408_v31 = vpop.f32.mrb[17].mxu0  ;;  %v1521_v52 = vpop.f32.mrb[17].mxu1 }
 0x2cc   : > { %v1643_v60 = vadd.f32 %v1609_v59, %v1408_v31  ;;  %v1645_v38 = vadd.f32 %v1609_v59, %v1521_v52  ;;  %v1410_v61 = vpop.f32.mrb[18].mxu0  ;;  %v1523_v62 = vpop.f32.mrb[18].mxu1  ;;  %1796 = vmatprep.subr.bf16.mxu0 %v1703_v56  ;;  %1869 = vmatprep.subr.bf16.mxu1 %v1705_v29  ;;  %v2956_v59 = vld [vmem:[%s3836_s8] sm:$0xff]   ;;  %v2959_v56 = vld [vmem:[%s3836_s8 + $0x18] sm:$0xff]  }
 0x2cd   : > { %v1646_v63 = vadd.f32 %v1614_v58, %v1410_v61  ;;  %v1648_v19 = vadd.f32 %v1614_v58, %v1523_v62  ;;  %v1412_v20 = vpop.f32.mrb[19].mxu0  ;;  %v1525_v21 = vpop.f32.mrb[19].mxu1  ;;  %1797 = vmatpush1.bf16.msra.mxu0 %v1702_v8  ;;  %1870 = vmatpush1.bf16.msra.mxu1 %v1704_v14  ;;  %v1674_v53 = vmax.f32 %v1642_v51, 0.0  ;;  %v1676_v10 = vmax.f32 %v1644_v57, 0.0  ;;  %v2957_v8 = vld [vmem:[%s3836_s8 + $0x8] sm:$0xff]   ;;  %v2958_v14 = vld [vmem:[%s3836_s8 + $0x10] sm:$0xff]  }
 0x2ce   : > { %v1647_v9 = vadd.f32 %v1614_v58, %v1412_v20  ;;  %v1649_v22 = vadd.f32 %v1614_v58, %v1525_v21  ;;  %v1675_v50 = vmax.f32 %v1643_v60, 0.0  ;;  %v1677_v37 = vmax.f32 %v1645_v38, 0.0  ;;  %v1730_v29 = vpop.permute.xlu0 %1729  ;;  %v1725_v30 = vpop.permute.xlu1 %1724 }
 0x2cf   : > { %v1678_v11 = vmax.f32 %v1646_v63, 0.0  ;;  %v1680_v1 = vmax.f32 %v1648_v19, 0.0 }
 0x2d0   : > { %v1679_v12 = vmax.f32 %v1647_v9, 0.0  ;;  %v1681_v17 = vmax.f32 %v1649_v22, 0.0 }
 0x2d1   : > { %v1706_v2 = vpack.c.bf16 %v1678_v11, %v1674_v53  ;;  %v1708_v24 = vpack.c.bf16 %v1680_v1, %v1676_v10 }
 0x2d2   : > { %v1707_v4 = vpack.c.bf16 %v1679_v12, %v1675_v50  ;;  %v1709_v25 = vpack.c.bf16 %v1681_v17, %v1677_v37  ;;  %v1416_v6 = vpop.f32.mrb[20].mxu0  ;;  %v1529_v26 = vpop.f32.mrb[20].mxu1 }
 0x2d3   : > { %v1650_v28 = vadd.f32 %v1619_v18, %v1416_v6  ;;  %v1652_v27 = vadd.f32 %v1619_v18, %v1529_v26  ;;  %v1418_v33 = vpop.f32.mrb[21].mxu0  ;;  %v1531_v34 = vpop.f32.mrb[21].mxu1 }
 0x2d4   : > { %v1651_v47 = vadd.f32 %v1619_v18, %v1418_v33  ;;  %v1653_v35 = vadd.f32 %v1619_v18, %v1531_v34  ;;  %v1420_v36 = vpop.f32.mrb[22].mxu0  ;;  %v1533_v39 = vpop.f32.mrb[22].mxu1  ;;  %1798 = vmatprep.subr.bf16.mxu0 %v1707_v4  ;;  %1871 = vmatprep.subr.bf16.mxu1 %v1709_v25 }
 0x2d5   : > { %v1654_v54 = vadd.f32 %v1624_v23, %v1420_v36  ;;  %v1656_v0 = vadd.f32 %v1624_v23, %v1533_v39  ;;  %v1422_v40 = vpop.f32.mrb[23].mxu0  ;;  %v1535_v41 = vpop.f32.mrb[23].mxu1  ;;  %1799 = vmatpush1.bf16.msra.mxu0 %v1706_v2  ;;  %1872 = vmatpush1.bf16.msra.mxu1 %v1708_v24  ;;  %v1682_v15 = vmax.f32 %v1650_v28, 0.0  ;;  %v1684_v16 = vmax.f32 %v1652_v27, 0.0 }
 0x2d6   : > { %v1655_v42 = vadd.f32 %v1624_v23, %v1422_v40  ;;  %v1657_v43 = vadd.f32 %v1624_v23, %v1535_v41  ;;  %v1683_v48 = vmax.f32 %v1651_v47, 0.0  ;;  %v1685_v49 = vmax.f32 %v1653_v35, 0.0  ;;  %v1740_v18 = vpop.permute.xlu0 %1739  ;;  %v1735_v2 = vpop.permute.xlu1 %1734 }
 0x2d7   : > { %v1686_v13 = vmax.f32 %v1654_v54, 0.0  ;;  %v1688_v3 = vmax.f32 %v1656_v0, 0.0 }
 0x2d8   : > { %v1687_v55 = vmax.f32 %v1655_v42, 0.0  ;;  %v1689_v44 = vmax.f32 %v1657_v43, 0.0 }
 0x2d9   : > { %v1710_v46 = vpack.c.bf16 %v1686_v13, %v1682_v15  ;;  %v1712_v45 = vpack.c.bf16 %v1688_v3, %v1684_v16 }
 0x2da   : > { %v1711_v7 = vpack.c.bf16 %v1687_v55, %v1683_v48  ;;  %v1713_v58 = vpack.c.bf16 %v1689_v44, %v1685_v49 }
 0x2dc   : > { %1800 = vmatprep.subr.bf16.mxu0 %v1711_v7  ;;  %1873 = vmatprep.subr.bf16.mxu1 %v1713_v58  ;;  %v1745_v7 = vpop.permute.xlu1 %1744 }
 0x2dd   : > { %1801 = vmatpush1.bf16.msra.mxu0 %v1710_v46  ;;  %1874 = vmatpush1.bf16.msra.mxu1 %v1712_v45  ;;  %v1750_v45 = vpop.permute.xlu0 %1749 }
 0x2e0   : > { %2786 = vmatmul.mubr.msk.bf16.vlgmr.msra.gmra.mrb[40].mxu0 %vm1150_vm0, %v2956_v59  ;;  %2790 = vmatmul.mubr.msk.bf16.vlgmr.msra.gmra.mrb[40].mxu1 %vm1150_vm0, %v2956_v59 }
 0x2e1   : > { %1836 = vmatprep.mubr.bf16.mxu0 %v3049_v5  ;;  %1909 = vmatprep.mubr.bf16.mxu1 %v3049_v5 }
 0x2e8   : > { %2787 = vmatmul.mubr.msk.bf16.gmra.mrb[44].mxu0 %vm1150_vm0, %v2957_v8  ;;  %2791 = vmatmul.mubr.msk.bf16.gmra.mrb[44].mxu1 %vm1150_vm0, %v2957_v8 }
 0x2e9   : > { %1846 = vmatprep.mubr.bf16.mxu0 %v3049_v5  ;;  %1919 = vmatprep.mubr.bf16.mxu1 %v3049_v5 }
 0x2f0   : > { %2788 = vmatmul.mubr.msk.bf16.gmra.mrb[48].mxu0 %vm1150_vm0, %v2958_v14  ;;  %2792 = vmatmul.mubr.msk.bf16.gmra.mrb[48].mxu1 %vm1150_vm0, %v2958_v14 }
 0x2f1   : > { %1856 = vmatprep.mubr.bf16.mxu0 %v3049_v5  ;;  %1929 = vmatprep.mubr.bf16.mxu1 %v3049_v5 }
 0x2f8   : > { %2789 = vmatmul.mubr.msk.bf16.gmra.mrb[52].mxu0 %vm1150_vm0, %v2959_v56  ;;  %2793 = vmatmul.mubr.msk.bf16.gmra.mrb[52].mxu1 %vm1150_vm0, %v2959_v56 }
 0x2f9   : > { %2042 = vmatprep.mubr.bf16.mxu0 %v3049_v5  ;;  %2085 = vmatprep.mubr.bf16.mxu1 %v3049_v5 }
 0x3b3   : > { %v1828_v32 = vpop.f32.mrb[40].mxu0  ;;  %v1901_v51 = vpop.f32.mrb[40].mxu1 }
 0x3b4   : > { %v1829_v57 = vadd.f32 %v1828_v32, %v1725_v30  ;;  %v1902_v31 = vadd.f32 %v1901_v51, %v1725_v30  ;;  %v1830_v52 = vpop.f32.mrb[41].mxu0  ;;  %v1903_v60 = vpop.f32.mrb[41].mxu1 }
 0x3b5   : > { %v1831_v38 = vadd.f32 %v1830_v52, %v1725_v30  ;;  %v1904_v61 = vadd.f32 %v1903_v60, %v1725_v30  ;;  %v1832_v62 = vpop.f32.mrb[42].mxu0  ;;  %v1905_v63 = vpop.f32.mrb[42].mxu1 }
 0x3b6   : > { %v1833_v19 = vadd.f32 %v1832_v62, %v1730_v29  ;;  %v1906_v20 = vadd.f32 %v1905_v63, %v1730_v29  ;;  %v1834_v21 = vpop.f32.mrb[43].mxu0  ;;  %v1907_v9 = vpop.f32.mrb[43].mxu1  ;;  %v1940_v10 = vmax.f32 %v1829_v57, 0.0  ;;  %v1942_v11 = vmax.f32 %v1902_v31, 0.0 }
 0x3b7   : > { %v1835_v22 = vadd.f32 %v1834_v21, %v1730_v29  ;;  %v1908_v53 = vadd.f32 %v1907_v9, %v1730_v29  ;;  %v1941_v37 = vmax.f32 %v1831_v38, 0.0  ;;  %v1943_v12 = vmax.f32 %v1904_v61, 0.0 }
 0x3b8   : > { %v1944_v1 = vmax.f32 %v1833_v19, 0.0  ;;  %v1946_v50 = vmax.f32 %v1906_v20, 0.0 }
 0x3b9   : > { %v1945_v17 = vmax.f32 %v1835_v22, 0.0  ;;  %v1947_v23 = vmax.f32 %v1908_v53, 0.0 }
 0x3ba   : > { %v1974_v24 = vpack.c.bf16 %v1944_v1, %v1940_v10  ;;  %v1976_v4 = vpack.c.bf16 %v1946_v50, %v1942_v11 }
 0x3bb   : > { %v1975_v25 = vpack.c.bf16 %v1945_v17, %v1941_v37  ;;  %v1977_v6 = vpack.c.bf16 %v1947_v23, %v1943_v12  ;;  %v1838_v26 = vpop.f32.mrb[44].mxu0  ;;  %v1911_v28 = vpop.f32.mrb[44].mxu1 }
 0x3bc   : > { %v1839_v27 = vadd.f32 %v1838_v26, %v1735_v2  ;;  %v1912_v33 = vadd.f32 %v1911_v28, %v1735_v2  ;;  %v1840_v34 = vpop.f32.mrb[45].mxu0  ;;  %v1913_v47 = vpop.f32.mrb[45].mxu1 }
 0x3bd   : > { %v1841_v35 = vadd.f32 %v1840_v34, %v1735_v2  ;;  %v1914_v36 = vadd.f32 %v1913_v47, %v1735_v2  ;;  %v1842_v39 = vpop.f32.mrb[46].mxu0  ;;  %v1915_v54 = vpop.f32.mrb[46].mxu1  ;;  %2010 = vmatprep.subr.bf16.mxu0 %v1975_v25  ;;  %2053 = vmatprep.subr.bf16.mxu1 %v1977_v6 }
 0x3be   : > { %v1843_v0 = vadd.f32 %v1842_v39, %v1740_v18  ;;  %v1916_v40 = vadd.f32 %v1915_v54, %v1740_v18  ;;  %v1844_v41 = vpop.f32.mrb[47].mxu0  ;;  %v1917_v42 = vpop.f32.mrb[47].mxu1  ;;  %2011 = vmatpush1.bf16.msra.mxu0 %v1974_v24  ;;  %2054 = vmatpush1.bf16.msra.mxu1 %v1976_v4  ;;  %v1948_v16 = vmax.f32 %v1839_v27, 0.0  ;;  %v1950_v13 = vmax.f32 %v1912_v33, 0.0 }
 0x3bf   : > { %v1845_v43 = vadd.f32 %v1844_v41, %v1740_v18  ;;  %v1918_v15 = vadd.f32 %v1917_v42, %v1740_v18  ;;  %v1949_v49 = vmax.f32 %v1841_v35, 0.0  ;;  %v1951_v55 = vmax.f32 %v1914_v36, 0.0  ;;  %v1760_v12 = vpop.permute.xlu0 %1759  ;;  %v1755_v17 = vpop.permute.xlu1 %1754 }
 0x3c0   : > { %v1952_v3 = vmax.f32 %v1843_v0, 0.0  ;;  %v1954_v48 = vmax.f32 %v1916_v40, 0.0 }
 0x3c1   : > { %v1953_v44 = vmax.f32 %v1845_v43, 0.0  ;;  %v1955_v46 = vmax.f32 %v1918_v15, 0.0 }
 0x3c2   : > { %v1978_v58 = vpack.c.bf16 %v1952_v3, %v1948_v16  ;;  %v1980_v59 = vpack.c.bf16 %v1954_v48, %v1950_v13 }
 0x3c3   : > { %v1979_v8 = vpack.c.bf16 %v1953_v44, %v1949_v49  ;;  %v1981_v14 = vpack.c.bf16 %v1955_v46, %v1951_v55  ;;  %v1848_v56 = vpop.f32.mrb[48].mxu0  ;;  %v1921_v29 = vpop.f32.mrb[48].mxu1 }
 0x3c4   : > { %v1849_v30 = vadd.f32 %v1848_v56, %v1745_v7  ;;  %v1922_v32 = vadd.f32 %v1921_v29, %v1745_v7  ;;  %v1850_v51 = vpop.f32.mrb[49].mxu0  ;;  %v1923_v57 = vpop.f32.mrb[49].mxu1 }
 0x3c5   : > { %v1851_v31 = vadd.f32 %v1850_v51, %v1745_v7  ;;  %v1924_v52 = vadd.f32 %v1923_v57, %v1745_v7  ;;  %v1852_v60 = vpop.f32.mrb[50].mxu0  ;;  %v1925_v38 = vpop.f32.mrb[50].mxu1  ;;  %2012 = vmatprep.subr.bf16.mxu0 %v1979_v8  ;;  %2055 = vmatprep.subr.bf16.mxu1 %v1981_v14  ;;  %v2960_v7 = vld [vmem:[%s3838_s10] sm:$0xff]  }
 0x3c6   : > { %v1853_v61 = vadd.f32 %v1852_v60, %v1750_v45  ;;  %v1926_v62 = vadd.f32 %v1925_v38, %v1750_v45  ;;  %v1854_v63 = vpop.f32.mrb[51].mxu0  ;;  %v1927_v19 = vpop.f32.mrb[51].mxu1  ;;  %2013 = vmatpush1.bf16.msra.mxu0 %v1978_v58  ;;  %2056 = vmatpush1.bf16.msra.mxu1 %v1980_v59  ;;  %v1956_v9 = vmax.f32 %v1849_v30, 0.0  ;;  %v1958_v22 = vmax.f32 %v1922_v32, 0.0 }
 0x3c7   : > { %v1855_v20 = vadd.f32 %v1854_v63, %v1750_v45  ;;  %v1928_v21 = vadd.f32 %v1927_v19, %v1750_v45  ;;  %v1957_v11 = vmax.f32 %v1851_v31, 0.0  ;;  %v1959_v1 = vmax.f32 %v1924_v52, 0.0  ;;  %v2000_v58 = vpop.permute.xlu0 %1999  ;;  %v1995_v59 = vpop.permute.xlu1 %1994 }
 0x3c8   : > { %v1960_v53 = vmax.f32 %v1853_v61, 0.0  ;;  %v1962_v10 = vmax.f32 %v1926_v62, 0.0 }
 0x3c9   : > { %v1961_v50 = vmax.f32 %v1855_v20, 0.0  ;;  %v1963_v37 = vmax.f32 %v1928_v21, 0.0 }
 0x3ca   : > { %v1982_v23 = vpack.c.bf16 %v1960_v53, %v1956_v9  ;;  %v1984_v18 = vpack.c.bf16 %v1962_v10, %v1958_v22 }
 0x3cb   : > { %v1983_v2 = vpack.c.bf16 %v1961_v50, %v1957_v11  ;;  %v1985_v24 = vpack.c.bf16 %v1963_v37, %v1959_v1  ;;  %v1858_v4 = vpop.f32.mrb[52].mxu0  ;;  %v1931_v25 = vpop.f32.mrb[52].mxu1 }
 0x3cc   : > { %v1859_v6 = vadd.f32 %v1858_v4, %v1755_v17  ;;  %v1932_v26 = vadd.f32 %v1931_v25, %v1755_v17  ;;  %v1860_v28 = vpop.f32.mrb[53].mxu0  ;;  %v1933_v27 = vpop.f32.mrb[53].mxu1 }
 0x3cd   : > { %v1861_v33 = vadd.f32 %v1860_v28, %v1755_v17  ;;  %v1934_v34 = vadd.f32 %v1933_v27, %v1755_v17  ;;  %v1862_v47 = vpop.f32.mrb[54].mxu0  ;;  %v1935_v35 = vpop.f32.mrb[54].mxu1  ;;  %2014 = vmatprep.subr.bf16.mxu0 %v1983_v2  ;;  %2057 = vmatprep.subr.bf16.mxu1 %v1985_v24  ;;  %v2963_v2 = vld [vmem:[%s3840_s12 + $0x10] sm:$0xff]   ;;  %v2964_v24 = vld [vmem:[%s3840_s12 + $0x18] sm:$0xff]  }
 0x3ce   : > { %v1863_v36 = vadd.f32 %v1862_v47, %v1760_v12  ;;  %v1936_v39 = vadd.f32 %v1935_v35, %v1760_v12  ;;  %v1864_v54 = vpop.f32.mrb[55].mxu0  ;;  %v1937_v0 = vpop.f32.mrb[55].mxu1  ;;  %2015 = vmatpush1.bf16.msra.mxu0 %v1982_v23  ;;  %2058 = vmatpush1.bf16.msra.mxu1 %v1984_v18  ;;  %v1964_v42 = vmax.f32 %v1859_v6, 0.0  ;;  %v1966_v43 = vmax.f32 %v1932_v26, 0.0  ;;  %v2961_v23 = vld [vmem:[%s3840_s12] sm:$0xff]   ;;  %v2962_v18 = vld [vmem:[%s3840_s12 + $0x8] sm:$0xff]  }
 0x3cf   : > { %v1865_v40 = vadd.f32 %v1864_v54, %v1760_v12  ;;  %v1938_v41 = vadd.f32 %v1937_v0, %v1760_v12  ;;  %v1965_v13 = vmax.f32 %v1861_v33, 0.0  ;;  %v1967_v3 = vmax.f32 %v1934_v34, 0.0  ;;  %v2311_v4 = vpop.permute.xlu0 %2310  ;;  %v2306_v25 = vpop.permute.xlu1 %2305 }
 0x3d0   : > { %v1968_v15 = vmax.f32 %v1863_v36, 0.0  ;;  %v1970_v16 = vmax.f32 %v1936_v39, 0.0 }
 0x3d1   : > { %v1969_v48 = vmax.f32 %v1865_v40, 0.0  ;;  %v1971_v49 = vmax.f32 %v1938_v41, 0.0 }
 0x3d2   : > { %v1986_v55 = vpack.c.bf16 %v1968_v15, %v1964_v42  ;;  %v1988_v44 = vpack.c.bf16 %v1970_v16, %v1966_v43 }
 0x3d3   : > { %v1987_v46 = vpack.c.bf16 %v1969_v48, %v1965_v13  ;;  %v1989_v45 = vpack.c.bf16 %v1971_v49, %v1967_v3 }
 0x3d5   : > { %2016 = vmatprep.subr.bf16.mxu0 %v1987_v46  ;;  %2059 = vmatprep.subr.bf16.mxu1 %v1989_v45  ;;  %v2321_v46 = vpop.permute.xlu0 %2320  ;;  %v2316_v45 = vpop.permute.xlu1 %2315 }
 0x3d6   : > { %2017 = vmatpush1.bf16.msra.mxu0 %v1986_v55  ;;  %2060 = vmatpush1.bf16.msra.mxu1 %v1988_v44 }
 0x3d9   : > { %2795 = vmatmul.mubr.msk.bf16.vlgmr.msra.gmra.mrb[56].mxu0 %vm1150_vm0, %v2960_v7  ;;  %2796 = vmatmul.mubr.msk.bf16.vlgmr.msra.gmra.mrb[56].mxu1 %vm1150_vm0, %v2960_v7 }
 0x3da   : > { %2181 = vmatprep.mubr.bf16.mxu0 %v3049_v5  ;;  %2254 = vmatprep.mubr.bf16.mxu1 %v3049_v5 }
 0x4ac   : > { %v2044_v8 = vpop.f32.mrb[56].mxu0  ;;  %v2087_v14 = vpop.f32.mrb[56].mxu1 }
 0x4ad   : > { %v2045_v56 = vadd.f32 %v2044_v8, %v1995_v59  ;;  %v2088_v29 = vadd.f32 %v2087_v14, %v1995_v59  ;;  %v2046_v30 = vpop.f32.mrb[57].mxu0  ;;  %v2089_v32 = vpop.f32.mrb[57].mxu1 }
 0x4ae   : > { %v2047_v51 = vadd.f32 %v2046_v30, %v1995_v59  ;;  %v2090_v57 = vadd.f32 %v2089_v32, %v1995_v59  ;;  %v2048_v31 = vpop.f32.mrb[58].mxu0  ;;  %v2091_v52 = vpop.f32.mrb[58].mxu1 }
 0x4af   : > { %v2049_v60 = vadd.f32 %v2048_v31, %v2000_v58  ;;  %v2092_v38 = vadd.f32 %v2091_v52, %v2000_v58  ;;  %v2050_v61 = vpop.f32.mrb[59].mxu0  ;;  %v2093_v62 = vpop.f32.mrb[59].mxu1  ;;  %v2096_v20 = vmax.f32 %v2045_v56, 0.0  ;;  %v2098_v21 = vmax.f32 %v2088_v29, 0.0 }
 0x4b0   : > { %v2051_v63 = vadd.f32 %v2050_v61, %v2000_v58  ;;  %v2094_v19 = vadd.f32 %v2093_v62, %v2000_v58  ;;  %v2097_v53 = vmax.f32 %v2047_v51, 0.0  ;;  %v2099_v10 = vmax.f32 %v2090_v57, 0.0 }
 0x4b1   : > { %v2100_v9 = vmax.f32 %v2049_v60, 0.0  ;;  %v2102_v22 = vmax.f32 %v2092_v38, 0.0 }
 0x4b2   : > { %v2101_v11 = vmax.f32 %v2051_v63, 0.0  ;;  %v2103_v1 = vmax.f32 %v2094_v19, 0.0 }
 0x4b3   : > { %v2112_v50 = vpack.c.bf16 %v2100_v9, %v2096_v20  ;;  %v2114_v37 = vpack.c.bf16 %v2102_v22, %v2098_v21 }
 0x4b4   : > { %v2113_v12 = vpack.c.bf16 %v2101_v11, %v2097_v53  ;;  %v2115_v17 = vpack.c.bf16 %v2103_v1, %v2099_v10 }
 0x4b6   : > { %2149 = vmatprep.subr.bf16.mxu0 %v2113_v12  ;;  %2222 = vmatprep.subr.bf16.mxu1 %v2115_v17  ;;  %v2326_v12 = vpop.permute.xlu1 %2325 }
 0x4b7   : > { %2150 = vmatpush1.bf16.msra.mxu0 %v2112_v50  ;;  %2223 = vmatpush1.bf16.msra.mxu1 %v2114_v37  ;;  %v2331_v37 = vpop.permute.xlu0 %2330 }
 0x4ba   : > { %2801 = vmatmul.mubr.msk.bf16.vlgmr.msra.gmra.mrb[24].mxu0 %vm2136_vm2, %v2961_v23  ;;  %2805 = vmatmul.mubr.msk.bf16.vlgmr.msra.gmra.mrb[24].mxu1 %vm2136_vm2, %v2961_v23 }
 0x4bb   : > { %2191 = vmatprep.mubr.bf16.mxu0 %v3049_v5  ;;  %2264 = vmatprep.mubr.bf16.mxu1 %v3049_v5 }
 0x4c2   : > { %2802 = vmatmul.mubr.msk.bf16.gmra.mrb[28].mxu0 %vm2136_vm2, %v2962_v18  ;;  %2806 = vmatmul.mubr.msk.bf16.gmra.mrb[28].mxu1 %vm2136_vm2, %v2962_v18 }
 0x4c3   : > { %2201 = vmatprep.mubr.bf16.mxu0 %v3049_v5  ;;  %2274 = vmatprep.mubr.bf16.mxu1 %v3049_v5 }
 0x4ca   : > { %2803 = vmatmul.mubr.msk.bf16.gmra.mrb[32].mxu0 %vm2136_vm2, %v2963_v2  ;;  %2807 = vmatmul.mubr.msk.bf16.gmra.mrb[32].mxu1 %vm2136_vm2, %v2963_v2 }
 0x4cb   : > { %2211 = vmatprep.mubr.bf16.mxu0 %v3049_v5  ;;  %2284 = vmatprep.mubr.bf16.mxu1 %v3049_v5 }
 0x4d2   : > { %2804 = vmatmul.mubr.msk.bf16.gmra.mrb[36].mxu0 %vm2136_vm2, %v2964_v24  ;;  %2808 = vmatmul.mubr.msk.bf16.gmra.mrb[36].mxu1 %vm2136_vm2, %v2964_v24 }
 0x4d3   : > { %2499 = vmatprep.mubr.bf16.mxu0 %v3049_v5  ;;  %2552 = vmatprep.mubr.bf16.mxu1 %v3049_v5 }
 0x58d   : > { %v2183_v6 = vpop.f32.mrb[24].mxu0  ;;  %v2256_v26 = vpop.f32.mrb[24].mxu1 }
 0x58e   : > { %v2343_v28 = vadd.f32 %v2306_v25, %v2183_v6  ;;  %v2345_v27 = vadd.f32 %v2306_v25, %v2256_v26  ;;  %v2185_v33 = vpop.f32.mrb[25].mxu0  ;;  %v2258_v34 = vpop.f32.mrb[25].mxu1 }
 0x58f   : > { %v2344_v47 = vadd.f32 %v2306_v25, %v2185_v33  ;;  %v2346_v35 = vadd.f32 %v2306_v25, %v2258_v34  ;;  %v2187_v36 = vpop.f32.mrb[26].mxu0  ;;  %v2260_v39 = vpop.f32.mrb[26].mxu1 }
 0x590   : > { %v2347_v54 = vadd.f32 %v2311_v4, %v2187_v36  ;;  %v2349_v0 = vadd.f32 %v2311_v4, %v2260_v39  ;;  %v2189_v40 = vpop.f32.mrb[27].mxu0  ;;  %v2262_v41 = vpop.f32.mrb[27].mxu1  ;;  %v2375_v15 = vmax.f32 %v2343_v28, 0.0  ;;  %v2377_v16 = vmax.f32 %v2345_v27, 0.0 }
 0x591   : > { %v2348_v42 = vadd.f32 %v2311_v4, %v2189_v40  ;;  %v2350_v43 = vadd.f32 %v2311_v4, %v2262_v41  ;;  %v2376_v48 = vmax.f32 %v2344_v47, 0.0  ;;  %v2378_v49 = vmax.f32 %v2346_v35, 0.0 }
 0x592   : > { %v2379_v13 = vmax.f32 %v2347_v54, 0.0  ;;  %v2381_v3 = vmax.f32 %v2349_v0, 0.0 }
 0x593   : > { %v2380_v55 = vmax.f32 %v2348_v42, 0.0  ;;  %v2382_v44 = vmax.f32 %v2350_v43, 0.0 }
 0x594   : > { %v2411_v7 = vpack.c.bf16 %v2379_v13, %v2375_v15  ;;  %v2413_v58 = vpack.c.bf16 %v2381_v3, %v2377_v16 }
 0x595   : > { %v2412_v59 = vpack.c.bf16 %v2380_v55, %v2376_v48  ;;  %v2414_v8 = vpack.c.bf16 %v2382_v44, %v2378_v49  ;;  %v2193_v14 = vpop.f32.mrb[28].mxu0  ;;  %v2266_v56 = vpop.f32.mrb[28].mxu1 }
 0x596   : > { %v2351_v29 = vadd.f32 %v2316_v45, %v2193_v14  ;;  %v2353_v30 = vadd.f32 %v2316_v45, %v2266_v56  ;;  %v2195_v32 = vpop.f32.mrb[29].mxu0  ;;  %v2268_v51 = vpop.f32.mrb[29].mxu1 }
 0x597   : > { %v2352_v57 = vadd.f32 %v2316_v45, %v2195_v32  ;;  %v2354_v31 = vadd.f32 %v2316_v45, %v2268_v51  ;;  %v2197_v52 = vpop.f32.mrb[30].mxu0  ;;  %v2270_v60 = vpop.f32.mrb[30].mxu1  ;;  %2467 = vmatprep.subr.bf16.mxu0 %v2412_v59  ;;  %2520 = vmatprep.subr.bf16.mxu1 %v2414_v8 }
 0x598   : > { %v2355_v38 = vadd.f32 %v2321_v46, %v2197_v52  ;;  %v2357_v61 = vadd.f32 %v2321_v46, %v2270_v60  ;;  %v2199_v62 = vpop.f32.mrb[31].mxu0  ;;  %v2272_v63 = vpop.f32.mrb[31].mxu1  ;;  %2468 = vmatpush1.bf16.msra.mxu0 %v2411_v7  ;;  %2521 = vmatpush1.bf16.msra.mxu1 %v2413_v58  ;;  %v2383_v21 = vmax.f32 %v2351_v29, 0.0  ;;  %v2385_v9 = vmax.f32 %v2353_v30, 0.0 }
 0x599   : > { %v2356_v19 = vadd.f32 %v2321_v46, %v2199_v62  ;;  %v2358_v20 = vadd.f32 %v2321_v46, %v2272_v63  ;;  %v2384_v10 = vmax.f32 %v2352_v57, 0.0  ;;  %v2386_v11 = vmax.f32 %v2354_v31, 0.0  ;;  %v2341_v49 = vpop.permute.xlu0 %2340  ;;  %v2336_v55 = vpop.permute.xlu1 %2335 }
 0x59a   : > { %v2387_v22 = vmax.f32 %v2355_v38, 0.0  ;;  %v2389_v53 = vmax.f32 %v2357_v61, 0.0 }
 0x59b   : > { %v2388_v1 = vmax.f32 %v2356_v19, 0.0  ;;  %v2390_v50 = vmax.f32 %v2358_v20, 0.0 }
 0x59c   : > { %v2415_v17 = vpack.c.bf16 %v2387_v22, %v2383_v21  ;;  %v2417_v23 = vpack.c.bf16 %v2389_v53, %v2385_v9 }
 0x59d   : > { %v2416_v18 = vpack.c.bf16 %v2388_v1, %v2384_v10  ;;  %v2418_v2 = vpack.c.bf16 %v2390_v50, %v2386_v11  ;;  %v2203_v24 = vpop.f32.mrb[32].mxu0  ;;  %v2276_v4 = vpop.f32.mrb[32].mxu1 }
 0x59e   : > { %v2359_v25 = vadd.f32 %v2326_v12, %v2203_v24  ;;  %v2361_v6 = vadd.f32 %v2326_v12, %v2276_v4  ;;  %v2205_v26 = vpop.f32.mrb[33].mxu0  ;;  %v2278_v28 = vpop.f32.mrb[33].mxu1 }
 0x59f   : > { %v2360_v27 = vadd.f32 %v2326_v12, %v2205_v26  ;;  %v2362_v33 = vadd.f32 %v2326_v12, %v2278_v28  ;;  %v2207_v34 = vpop.f32.mrb[34].mxu0  ;;  %v2280_v47 = vpop.f32.mrb[34].mxu1  ;;  %2469 = vmatprep.subr.bf16.mxu0 %v2416_v18  ;;  %2522 = vmatprep.subr.bf16.mxu1 %v2418_v2  ;;  %v2965_v12 = vld [vmem:[%s3842_s14] sm:$0xff]  }
 0x5a0   : > { %v2363_v35 = vadd.f32 %v2331_v37, %v2207_v34  ;;  %v2365_v36 = vadd.f32 %v2331_v37, %v2280_v47  ;;  %v2209_v39 = vpop.f32.mrb[35].mxu0  ;;  %v2282_v54 = vpop.f32.mrb[35].mxu1  ;;  %2470 = vmatpush1.bf16.msra.mxu0 %v2415_v17  ;;  %2523 = vmatpush1.bf16.msra.mxu1 %v2417_v23  ;;  %v2391_v41 = vmax.f32 %v2359_v25, 0.0  ;;  %v2393_v42 = vmax.f32 %v2361_v6, 0.0  ;;  %v2966_v17 = vld [vmem:[%s3842_s14 + $0x8] sm:$0xff]  }
 0x5a1   : > { %v2364_v0 = vadd.f32 %v2331_v37, %v2209_v39  ;;  %v2366_v40 = vadd.f32 %v2331_v37, %v2282_v54  ;;  %v2392_v16 = vmax.f32 %v2360_v27, 0.0  ;;  %v2394_v13 = vmax.f32 %v2362_v33, 0.0  ;;  %v2439_v23 = vpop.permute.xlu0 %2438  ;;  %v2434_v18 = vpop.permute.xlu1 %2433 }
 0x5a2   : > { %v2395_v43 = vmax.f32 %v2363_v35, 0.0  ;;  %v2397_v15 = vmax.f32 %v2365_v36, 0.0 }
 0x5a3   : > { %v2396_v3 = vmax.f32 %v2364_v0, 0.0  ;;  %v2398_v48 = vmax.f32 %v2366_v40, 0.0 }
 0x5a4   : > { %v2419_v44 = vpack.c.bf16 %v2395_v43, %v2391_v41  ;;  %v2421_v46 = vpack.c.bf16 %v2397_v15, %v2393_v42 }
 0x5a5   : > { %v2420_v45 = vpack.c.bf16 %v2396_v3, %v2392_v16  ;;  %v2422_v7 = vpack.c.bf16 %v2398_v48, %v2394_v13  ;;  %v2213_v58 = vpop.f32.mrb[36].mxu0  ;;  %v2286_v59 = vpop.f32.mrb[36].mxu1 }
 0x5a6   : > { %v2367_v8 = vadd.f32 %v2336_v55, %v2213_v58  ;;  %v2369_v14 = vadd.f32 %v2336_v55, %v2286_v59  ;;  %v2215_v56 = vpop.f32.mrb[37].mxu0  ;;  %v2288_v29 = vpop.f32.mrb[37].mxu1 }
 0x5a7   : > { %v2368_v30 = vadd.f32 %v2336_v55, %v2215_v56  ;;  %v2370_v32 = vadd.f32 %v2336_v55, %v2288_v29  ;;  %v2217_v51 = vpop.f32.mrb[38].mxu0  ;;  %v2290_v57 = vpop.f32.mrb[38].mxu1  ;;  %2471 = vmatprep.subr.bf16.mxu0 %v2420_v45  ;;  %2524 = vmatprep.subr.bf16.mxu1 %v2422_v7 }
 0x5a8   : > { %v2371_v31 = vadd.f32 %v2341_v49, %v2217_v51  ;;  %v2373_v52 = vadd.f32 %v2341_v49, %v2290_v57  ;;  %v2219_v60 = vpop.f32.mrb[39].mxu0  ;;  %v2292_v38 = vpop.f32.mrb[39].mxu1  ;;  %2472 = vmatpush1.bf16.msra.mxu0 %v2419_v44  ;;  %2525 = vmatpush1.bf16.msra.mxu1 %v2421_v46  ;;  %v2399_v63 = vmax.f32 %v2367_v8, 0.0  ;;  %v2401_v19 = vmax.f32 %v2369_v14, 0.0 }
 0x5a9   : > { %v2372_v61 = vadd.f32 %v2341_v49, %v2219_v60  ;;  %v2374_v62 = vadd.f32 %v2341_v49, %v2292_v38  ;;  %v2400_v9 = vmax.f32 %v2368_v30, 0.0  ;;  %v2402_v22 = vmax.f32 %v2370_v32, 0.0  ;;  %v2449_v43 = vpop.permute.xlu0 %2448  ;;  %v2444_v15 = vpop.permute.xlu1 %2443 }
 0x5aa   : > { %v2403_v20 = vmax.f32 %v2371_v31, 0.0  ;;  %v2405_v21 = vmax.f32 %v2373_v52, 0.0 }
 0x5ab   : > { %v2404_v53 = vmax.f32 %v2372_v61, 0.0  ;;  %v2406_v10 = vmax.f32 %v2374_v62, 0.0 }
 0x5ac   : > { %v2423_v11 = vpack.c.bf16 %v2403_v20, %v2399_v63  ;;  %v2425_v1 = vpack.c.bf16 %v2405_v21, %v2401_v19 }
 0x5ad   : > { %v2424_v50 = vpack.c.bf16 %v2404_v53, %v2400_v9  ;;  %v2426_v37 = vpack.c.bf16 %v2406_v10, %v2402_v22 }
 0x5af   : > { %2473 = vmatprep.subr.bf16.mxu0 %v2424_v50  ;;  %2526 = vmatprep.subr.bf16.mxu1 %v2426_v37 }
 0x5b0   : > { %2474 = vmatpush1.bf16.msra.mxu0 %v2423_v11  ;;  %2527 = vmatpush1.bf16.msra.mxu1 %v2425_v1 }
 0x5b3   : > { %2811 = vmatmul.mubr.msk.bf16.vlgmr.msra.gmra.mrb[60].mxu0 %vm1150_vm0, %v2965_v12  ;;  %2813 = vmatmul.mubr.msk.bf16.vlgmr.msra.gmra.mrb[60].mxu1 %vm1150_vm0, %v2965_v12 }
 0x5b4   : > { %2509 = vmatprep.mubr.bf16.mxu0 %v3049_v5  ;;  %2562 = vmatprep.mubr.bf16.mxu1 %v3049_v5 }
 0x5bb   : > { %2812 = vmatmul.mubr.msk.bf16.gmra.mrb[64].mxu0 %vm1150_vm0, %v2966_v17  ;;  %2814 = vmatmul.mubr.msk.bf16.gmra.mrb[64].mxu1 %vm1150_vm0, %v2966_v17 }
 0x686   : > { %v2501_v2 = vpop.f32.mrb[60].mxu0  ;;  %v2554_v24 = vpop.f32.mrb[60].mxu1 }
 0x687   : > { %v2502_v4 = vadd.f32 %v2501_v2, %v2434_v18  ;;  %v2555_v25 = vadd.f32 %v2554_v24, %v2434_v18  ;;  %v2503_v6 = vpop.f32.mrb[61].mxu0  ;;  %v2556_v26 = vpop.f32.mrb[61].mxu1 }
 0x688   : > { %v2504_v5 = vadd.f32 %v2503_v6, %v2434_v18  ;;  %v2557_v28 = vadd.f32 %v2556_v26, %v2434_v18  ;;  %v2505_v27 = vpop.f32.mrb[62].mxu0  ;;  %v2558_v33 = vpop.f32.mrb[62].mxu1 }
 0x689   : > { %v2506_v34 = vadd.f32 %v2505_v27, %v2439_v23  ;;  %v2559_v47 = vadd.f32 %v2558_v33, %v2439_v23  ;;  %v2507_v35 = vpop.f32.mrb[63].mxu0  ;;  %v2560_v36 = vpop.f32.mrb[63].mxu1 }
 0x68a   : > { %v2830_v39 = vpack.c.bf16 %v2504_v5, %v2502_v4  ;;  %v2831_v54 = vpack.c.bf16 %v2557_v28, %v2555_v25  ;;  %v2508_v0 = vadd.f32 %v2507_v35, %v2439_v23  ;;  %v2561_v40 = vadd.f32 %v2560_v36, %v2439_v23 }
 0x68c   : > { %2621 = vst [vmem:[%s3761_s28] sm:$0xff] %v2830_v39  ;;  %2622 = vst [vmem:[%s3761_s28 + $0x8] sm:$0xff] %v2831_v54  ;;  %v2832_v41 = vpack.c.bf16 %v2508_v0, %v2506_v34  ;;  %v2833_v42 = vpack.c.bf16 %v2561_v40, %v2559_v47 }
 0x68e   : > { %2623 = vst [vmem:[%s3761_s28 + $0x10] sm:$0xff] %v2832_v41  ;;  %2624 = vst [vmem:[%s3761_s28 + $0x18] sm:$0xff] %v2833_v42  ;;  %v2511_v16 = vpop.f32.mrb[64].mxu0  ;;  %v2564_v13 = vpop.f32.mrb[64].mxu1 }
 0x68f   : > { %v2512_v3 = vadd.f32 %v2511_v16, %v2444_v15  ;;  %v2565_v48 = vadd.f32 %v2564_v13, %v2444_v15  ;;  %v2513_v49 = vpop.f32.mrb[65].mxu0  ;;  %v2566_v55 = vpop.f32.mrb[65].mxu1 }
 0x690   : > { %v2514_v44 = vadd.f32 %v2513_v49, %v2444_v15  ;;  %v2567_v46 = vadd.f32 %v2566_v55, %v2444_v15  ;;  %v2515_v45 = vpop.f32.mrb[66].mxu0  ;;  %v2568_v7 = vpop.f32.mrb[66].mxu1 }
 0x691   : > { %v2516_v58 = vadd.f32 %v2515_v45, %v2449_v43  ;;  %v2569_v59 = vadd.f32 %v2568_v7, %v2449_v43  ;;  %v2517_v8 = vpop.f32.mrb[67].mxu0  ;;  %v2570_v14 = vpop.f32.mrb[67].mxu1 }
 0x692   : > { %v2834_v56 = vpack.c.bf16 %v2514_v44, %v2512_v3  ;;  %v2835_v29 = vpack.c.bf16 %v2567_v46, %v2565_v48  ;;  %v2518_v30 = vadd.f32 %v2517_v8, %v2449_v43  ;;  %v2571_v32 = vadd.f32 %v2570_v14, %v2449_v43 }
 0x694   : > { %2625 = vst [vmem:[%s3761_s28 + $0x20] sm:$0xff] %v2834_v56  ;;  %2626 = vst [vmem:[%s3761_s28 + $0x28] sm:$0xff] %v2835_v29  ;;  %v2836_v51 = vpack.c.bf16 %v2518_v30, %v2516_v58  ;;  %v2837_v57 = vpack.c.bf16 %v2571_v32, %v2569_v59 }
 0x696   : > { %2627 = vst [vmem:[%s3761_s28 + $0x30] sm:$0xff] %v2836_v51  ;;  %2628 = vst [vmem:[%s3761_s28 + $0x38] sm:$0xff] %v2837_v57 }
 0x697   : > { %2980 = shalt.err (!%p2977_p5)
}
 0x698   : > { %s2981_s19 = scalar_lea.hbm %s3772_s2, 1024  ;;  %s2985_s29 = scalar_lea.hbm %s3844_s16, 2048 }
 0x699   : > { %p2982_p6 = scmp.ne.s32.totalorder %s3772_s2, %s2981_s19  ;;  %p2986_p10 = scmp.lt.u32.totalorder %s3772_s2, %s3844_s16 }
 0x69a   : > { %p2987_p11 = scmp.lt.u32.totalorder %s2985_s29, %s2981_s19  ;;  %p2989_p13 = scmp.lt.u32.totalorder %s2981_s19, %s3772_s2 }
 0x69b   : > { %p2983_p7 = pnand %p2982_p6, %p3178_p4 }
 0x69c   : > { %p2988_p12 = por %p2987_p11, %p2986_p10 }
 0x69d   : > { %p2984_p9 = pneg %p2983_p7 }
 0x69e   : > { %p2990_p0 = por %p2989_p13, %p2988_p12 }
 0x6a0   : > { %p2991_p1 = pnand %p2990_p0, %p2984_p9 }
 0x6a2   : > { %2994 = shalt.err (!%p2991_p1)
}
 0x6a3   : > { %s3051_s30 = smov 256   ;;  %s3052_s23 = smov 16  }
 0x6a4   : > { %2871 = dma.vmem_to_hbm [thread:$0]  (%p3178_p4), %s3774_s27, 1024, %s3772_s2, %s3782_s24, %s3051_s30, %s3051_s30, %s3052_s23  }
 0x6a5 PF: > { %p2877_p2 = scmp.ge.s32.totalorder %s3045_s26, 2  ;;  %s2660_s28 = sand.u32 1, %s3025_s21  }
 0x6a6   : > { %s2661_s19 = scalar_lea.sflag [#allocation3], %s2660_s28 }
 0x6a7   : > { %p2874_p3 = pnand %p2877_p2, %p3185_p8 }
 0x6a9   : > { %3020 = dma.done.wait (!%p2874_p3), %s2661_s19, 1024  }
 0x6aa   : > { %3022 = vsyncadd (!%p2874_p3), %s2661_s19, 4294966272  ;;  %s29_s26 = sadd.s32 1, %s3045_s26   ;;  %s3858_s17 = sld [smem:[#allocation5_spill]] }
 0x6ab   : > { %p26_p5 = scmp.ge.s32.totalorder %s29_s26, 4   ;;  %s3859_s23 = sld [smem:[#allocation8_spill]] }
 0x6ac   : > { %s3860_s24 = sld [smem:[#allocation6_spill]]  ;;  %s3861_s25 = sld [smem:[#allocation7_spill]] }
 0x6ad   : > { %s3862_s21 = smov %s3029_s22  ;;  %28 = sbr.rel (!%p26_p5) target bundleno = 7 (0x7), region = 122 }
 0x6b0   : > { %s3863_s22 = smov %s3858_s17 }
 0x6b4   :  { %2666 = vsyncpa [#allocation3], 1 }
 0x6b5   :  { %2668 = vsyncpa [#allocation3 + $0x1], 1 }

</bundles_post_ra>
